<compile_context>
chip_gen: v7x
topology: tpu7x:2x2x1
jax: 0.10.0
libtpu: 0.0.40
codegen_flags: <defaults>
</compile_context>

<pallas_src>
import functools

import jax
import jax.numpy as jnp
from jax import lax
from jax.experimental import pallas as pl
from jax.experimental.pallas import tpu as pltpu

KSIZE = 3
EPS = 1e-5
LANE = 128
VMEM_TILE_BUDGET = 20 * 1024 * 1024     # double-buffered working-set target (v7x-safe)
VMEM_LIMIT = 48 * 1024 * 1024


def _round_up(x, m):
    return ((x + m - 1) // m) * m


# --------------------------------------------------------------------------- #
# Pallas kernel: fused (reparameterized RepVGGBlock + 1x1 ConvModule);
# one (batch, row-tile) step per grid point.
# --------------------------------------------------------------------------- #
def _make_block_kernel(tap_offsets, th, wo):
    def kernel(x_ref, w3_ref, b_ref, wcm_ref, bcm_ref, o_ref):
        # x_ref  : (TIN, W_in, Cin_p)  bf16 halo'd input window (phase-stacked if stride 2)
        # w3_ref : (9*Cin_p, Cout_p)   bf16 reparameterized + BN-folded 3x3 weights
        # b_ref  : (1, Cout_p)         f32  fused bias (3x3 + 1x1 + identity BN)
        # wcm_ref: (Cout_p, Cout_p)    bf16 ConvModule 1x1 weights (BN folded)
        # bcm_ref: (1, Cout_p)         f32
        # o_ref  : (th, wo, Cout_p)    bf16
        cin = x_ref.shape[-1]
        cout = o_ref.shape[-1]
        rows = th * wo

        # Build the im2col operand from 9 static shifted views of the VMEM tile.
        taps = [x_ref[dh:dh + th, dw:dw + wo, :].reshape(rows, cin)
                for (dh, dw) in tap_offsets]
        im2col = jnp.concatenate(taps, axis=-1)                  # (rows, 9*Cin_p)

        # RepVGGBlock: single MXU matmul (1x1 + identity already folded in) + ReLU.
        acc = jnp.dot(im2col, w3_ref[...], preferred_element_type=jnp.float32)
        acc = acc + b_ref[...]
        z = jnp.maximum(acc, 0.0).astype(wcm_ref.dtype)          # f32 epilogue, bf16 operand

        # ConvModule: 1x1 conv (BN folded) + ReLU, f32 epilogue.
        y = jnp.dot(z, wcm_ref[...], preferred_element_type=jnp.float32) + bcm_ref[...]
        y = jnp.maximum(y, 0.0)
        o_ref[...] = y.reshape(th, wo, cout).astype(o_ref.dtype)

    return kernel


# --------------------------------------------------------------------------- #
# Tiling / windowing glue
# --------------------------------------------------------------------------- #
def _pick_tile_rows(ho, wo, cin_p, cout_p, stride):
    """Largest output-row tile whose double-buffered working set fits the budget."""
    def usage(th):
        if stride == 1:
            tin, w_in = th + 2, wo + 2
        else:
            tin, w_in = 4 * (th + 1), wo + 1
        rows = th * wo
        b = 2 * tin * w_in * cin_p * 2                         # input window x2, bf16
        b += 2 * rows * cout_p * 2                             # output tile x2, bf16
        b += rows * KSIZE * KSIZE * cin_p * 2                  # in-kernel im2col, bf16
        b += 2 * rows * cout_p * 4                             # f32 accumulators
        b += 2 * (KSIZE * KSIZE * cin_p + cout_p) * cout_p * 2 + 4 * cout_p * 8
        return b

    th = ho
    while th > 8 and usage(th) > VMEM_TILE_BUDGET:
        th = max(8, ((th + 1) // 2) // 8 * 8)
    return max(1, min(th, ho))


def _fused_block(x, p, stride):
    """One fused (RepVGGBlock + ConvModule) layer.

    x: (N, H, W, Cin_p) bf16 NHWC with channels padded to a multiple of 128.
    Returns (N, Ho, Wo, Cout_p) bf16.
    """
    n, h, w, cin_p = x.shape
    cout_p = p["wcm"].shape[-1]

    if stride == 1:
        ho, wo = h, w
    else:
        ho, wo = (h - 1) // 2 + 1, (w - 1) // 2 + 1

    th = _pick_tile_rows(ho, wo, cin_p, cout_p, stride)
    n_t = -(-ho // th)

    if stride == 1:
        # Padded input; overlapping row windows carry the 2-row 3x3 halo.
        xp = jnp.pad(x, ((0, 0), (1, 1 + n_t * th - ho), (1, 1), (0, 0)))
        if n_t == 1:
            wins = xp[:, None]
        else:
            wins = jnp.stack([xp[:, t * th:t * th + th + 2] for t in range(n_t)], axis=1)
        tin, w_in = th + 2, wo + 2
        tap_offsets = [(kh, kw) for kh in range(KSIZE) for kw in range(KSIZE)]
    else:
        # Stride 2: 2x2 phase decimation of the padded input; every tap becomes a
        # unit-shifted slice of one phase -> no 9x im2col replication in HBM.
        xp = jnp.pad(x, ((0, 0), (1, 1), (1, 1), (0, 0)))
        hd, wd = n_t * th + 1, wo + 1
        phases = []
        for a in range(2):
            for b in range(2):
                ph = xp[:, a::2, b::2, :]
                phases.append(jnp.pad(
                    ph, ((0, 0), (0, hd - ph.shape[1]), (0, wd - ph.shape[2]), (0, 0))))
        ph = jnp.stack(phases, axis=1)                           # (N, 4, hd, wd, C)
        if n_t == 1:
            wins = ph[:, None]
        else:
            wins = jnp.stack([ph[:, :, t * th:t * th + th + 1] for t in range(n_t)], axis=1)
        wins = wins.reshape(n, n_t, 4 * (th + 1), wd, cin_p)
        tin, w_in = 4 * (th + 1), wo + 1
        tap_offsets = [(((kh % 2) * 2 + (kw % 2)) * (th + 1) + kh // 2, kw // 2)
                       for kh in range(KSIZE) for kw in range(KSIZE)]

    rows = th * wo
    flops = 2 * n * n_t * rows * (KSIZE * KSIZE * cin_p + cout_p) * cout_p
    bytes_accessed = (wins.size * 2
                      + (KSIZE * KSIZE * cin_p + cout_p) * cout_p * 2
                      + 2 * cout_p * 4
                      + n * n_t * rows * cout_p * 2)

    out = pl.pallas_call(
        _make_block_kernel(tap_offsets, th, wo),
        out_shape=jax.ShapeDtypeStruct((n, n_t, th, wo, cout_p), jnp.bfloat16),
        grid=(n, n_t),
        in_specs=[
            pl.BlockSpec((None, None, tin, w_in, cin_p), lambda b, t: (b, t, 0, 0, 0)),
            # Weights / biases: constant index_maps -> resident, no per-step re-DMA.
            pl.BlockSpec((KSIZE * KSIZE * cin_p, cout_p), lambda b, t: (0, 0)),
            pl.BlockSpec((1, cout_p), lambda b, t: (0, 0)),
            pl.BlockSpec((cout_p, cout_p), lambda b, t: (0, 0)),
            pl.BlockSpec((1, cout_p), lambda b, t: (0, 0)),
        ],
        out_specs=pl.BlockSpec((None, None, th, wo, cout_p),
                               lambda b, t: (b, t, 0, 0, 0)),
        compiler_params=pltpu.CompilerParams(
            dimension_semantics=("parallel", "parallel"),
            vmem_limit_bytes=VMEM_LIMIT),
        cost_estimate=pl.CostEstimate(flops=flops, transcendentals=0,
                                      bytes_accessed=bytes_accessed),
    )(wins, p["w3"], p["b"], p["wcm"], p["bcm"])

    out = out.reshape(n, n_t * th, wo, cout_p)[:, :ho]
    return out


def repvgg_stage_forward(x_nchw, kparams, out_ch):
    """RepVGGStage forward: (N, C, H, W) f32 -> (N, stage_ch, H/2, W/2) f32."""
    x = jnp.transpose(x_nchw, (0, 2, 3, 1))                     # NCHW -> NHWC
    cin = x.shape[-1]
    cin_p = _round_up(cin, LANE)
    x = jnp.pad(x, ((0, 0), (0, 0), (0, 0), (0, cin_p - cin))).astype(jnp.bfloat16)
    for i, p in enumerate(kparams):
        stride = 2 if i == 0 else 1
        x = _fused_block(x, p, stride)
    x = x[..., :out_ch].astype(jnp.float32)
    return jnp.transpose(x, (0, 3, 1, 2))                       # NHWC -> NCHW


# --------------------------------------------------------------------------- #
# Deterministic parameter construction (conv weights + eval-mode-folded BN)
# --------------------------------------------------------------------------- #
def _bn_fold(kg, kb, km, kv, c):
    gamma = 1.0 + 0.1 * jax.random.normal(kg, (c,), jnp.float32)
    beta = 0.1 * jax.random.normal(kb, (c,), jnp.float32)
    mean = 0.1 * jax.random.normal(km, (c,), jnp.float32)
    var = 0.5 + 0.1 * jnp.abs(jax.random.normal(kv, (c,), jnp.float32))
    s = gamma / jnp.sqrt(var + EPS)
    t = beta - mean * s
    return s, t


def init_params(key, in_ch, stage_ch, num_block):
    """Per-branch, BN-folded f32 params (exact for eval mode)."""
    params = []
    cin = in_ch
    for b in range(num_block):
        ks = jax.random.split(key, 20)
        key = ks[19]
        cout = stage_ch
        stride = 2 if b == 0 else 1

        # 3x3 conv + BN
        w3 = 0.1 * jax.random.normal(ks[0], (cout, cin, KSIZE, KSIZE), jnp.float32)
        s3, t3 = _bn_fold(ks[1], ks[2], ks[3], ks[4], cout)
        w3_eff = (jnp.transpose(w3, (2, 3, 1, 0)).reshape(KSIZE * KSIZE, cin, cout)
                  * s3[None, None, :])

        # 1x1 conv + BN
        w1 = 0.1 * jax.random.normal(ks[5], (cout, cin, 1, 1), jnp.float32)
        s1, t1 = _bn_fold(ks[6], ks[7], ks[8], ks[9], cout)
        w1_eff = w1[:, :, 0, 0].T * s1[None, :]

        # identity BN branch (only stride 1 with Cin == Cout)
        has_id = (stride == 1 and cin == cout)
        if has_id:
            sid, tid = _bn_fold(ks[10], ks[11], ks[12], ks[13], cout)
            sid = sid.reshape(1, cout)
            tid = tid.reshape(1, cout)
        else:
            sid, tid = None, None

        # ConvModule 1x1 conv + BN
        wcm = 0.1 * jax.random.normal(ks[14], (cout, cout, 1, 1), jnp.float32)
        scm, tcm = _bn_fold(ks[15], ks[16], ks[17], ks[18], cout)
        wcm_eff = wcm[:, :, 0, 0].T * scm[None, :]

        params.append(dict(
            w3=w3_eff, b3=t3.reshape(1, cout),
            w1=w1_eff, b1=t1.reshape(1, cout),
            sid=sid, bid=tid,
            wcm=wcm_eff, bcm=tcm.reshape(1, cout),
        ))
        cin = cout
    return params


def prepare_kernel_params(params):
    """RepVGG inference reparameterization + lane padding + bf16 cast.

    Folds the 1x1 branch into the centre tap of the 3x3 weights, the identity BN
    into the diagonal of the centre tap, sums all branch biases, pads channels to
    multiples of 128, and lays the 3x3 weights out as a single (9*Cin_p, Cout_p)
    matrix matching the kernel's im2col operand.
    """
    out = []
    for p in params:
        w3 = p["w3"]                                    # (9, Cin, Cout) f32
        cin, cout = w3.shape[1], w3.shape[2]
        w3 = w3.at[4].add(p["w1"])                      # fold 1x1 branch into centre tap
        if p["sid"] is not None:
            w3 = w3.at[4].add(jnp.diag(p["sid"][0]))    # fold identity BN (Cin == Cout)
        b = p["b3"] + p["b1"] + (p["bid"] if p["bid"] is not None else 0.0)

        cin_p = _round_up(cin, LANE)
        cout_p = _round_up(cout, LANE)
        w3p = jnp.zeros((KSIZE * KSIZE, cin_p, cout_p), jnp.float32)
        w3p = w3p.at[:, :cin, :cout].set(w3)
        bp = jnp.zeros((1, cout_p), jnp.float32).at[:, :cout].set(b)
        wcmp = jnp.zeros((cout_p, cout_p), jnp.float32).at[:cout, :cout].set(p["wcm"])
        bcmp = jnp.zeros((1, cout_p), jnp.float32).at[:, :cout].set(p["bcm"])

        out.append(dict(
            w3=w3p.reshape(KSIZE * KSIZE * cin_p, cout_p).astype(jnp.bfloat16),
            b=bp,
            wcm=wcmp.astype(jnp.bfloat16),
            bcm=bcmp,
        ))
    out_ch = params[-1]["w3"].shape[2]
    return out, out_ch


# --------------------------------------------------------------------------- #
# Pure-JAX f32 reference (unfused branches, lax.conv) for a sanity check
# --------------------------------------------------------------------------- #
def _ref_stage(x_nchw, params):
    dn = ("NHWC", "HWIO", "NHWC")
    x = jnp.transpose(x_nchw, (0, 2, 3, 1))
    for i, p in enumerate(params):
        stride = 2 if i == 0 else 1
        cin = x.shape[-1]
        cout = p["w3"].shape[2]
        w3 = p["w3"].reshape(KSIZE, KSIZE, cin, cout)
        y = lax.conv_general_dilated(x, w3, (stride, stride), ((1, 1), (1, 1)),
                                     dimension_numbers=dn) + p["b3"][0]
        y = y + lax.conv_general_dilated(x, p["w1"][None, None], (stride, stride),
                                         ((0, 0), (0, 0)),
                                         dimension_numbers=dn) + p["b1"][0]
        if p["sid"] is not None:
            y = y + x * p["sid"][0] + p["bid"][0]
        z = jnp.maximum(y, 0.0)
        y = lax.conv_general_dilated(z, p["wcm"][None, None], (1, 1),
                                     ((0, 0), (0, 0)),
                                     dimension_numbers=dn) + p["bcm"][0]
        x = jnp.maximum(y, 0.0)
    return jnp.transpose(x, (0, 3, 1, 2))


if __name__ == "__main__":
    key = jax.random.PRNGKey(0)
    kx, kp = jax.random.split(key)

    # Small shapes consistent with the module: batch=2, in_ch=4, spatial=16,
    # stage_ch=8, num_block=2.
    x = jax.random.normal(kx, (2, 4, 16, 16), jnp.float32)    # NCHW
    params = init_params(kp, in_ch=4, stage_ch=8, num_block=2)
    kparams, out_ch = prepare_kernel_params(params)

    fwd = jax.jit(functools.partial(repvgg_stage_forward, out_ch=out_ch))
    y = jax.block_until_ready(fwd(x, kparams))
    assert y.shape == (2, 8, 8, 8), y.shape

    y_ref = jax.block_until_ready(_ref_stage(x, params))
    # Kernel uses bf16 matmul operands with f32 accumulation; compare against the
    # pure-f32, unfused-branch reference with a bf16-appropriate tolerance.
    assert jnp.allclose(y, y_ref, rtol=3e-2, atol=3e-2), float(jnp.max(jnp.abs(y - y_ref)))

    print("KERNEL_OK")
</pallas_src>

<mosaic_0001>
module attributes {stable_mosaic.version = 11 : i64} {
  func.func @kernel(%arg0: i32, %arg1: i32, %arg2: memref<1x1x36x9x128xbf16, #tpu.memory_space<vmem>>, %arg3: memref<1152x128xbf16, #tpu.memory_space<vmem>>, %arg4: memref<1x128xf32, #tpu.memory_space<vmem>>, %arg5: memref<128x128xbf16, #tpu.memory_space<vmem>>, %arg6: memref<1x128xf32, #tpu.memory_space<vmem>>, %arg7: memref<1x1x8x8x128xbf16, #tpu.memory_space<vmem>>) attributes {dimension_semantics = [#tpu.dimension_semantics<parallel>, #tpu.dimension_semantics<parallel>], iteration_bounds = array<i64: 2, 1>, scalar_prefetch = 0 : i64, scratch_operands = 0 : i64, tpu.core_type = #tpu.core_type<tc>, window_params = [{transform_indices = @transform_0, window_bounds = array<i64: 1, 1, 36, 9, 128>}, {pipeline_mode = #tpu.pipeline_mode<synchronous>, transform_indices = @transform_1, window_bounds = array<i64: 1152, 128>}, {pipeline_mode = #tpu.pipeline_mode<synchronous>, transform_indices = @transform_2, window_bounds = array<i64: 1, 128>}, {pipeline_mode = #tpu.pipeline_mode<synchronous>, transform_indices = @transform_3, window_bounds = array<i64: 128, 128>}, {pipeline_mode = #tpu.pipeline_mode<synchronous>, transform_indices = @transform_4, window_bounds = array<i64: 1, 128>}, {transform_indices = @transform_5, window_bounds = array<i64: 1, 1, 8, 8, 128>}]} {
    %c0 = arith.constant 0 : index
    %c0_0 = arith.constant 0 : index
    %c0_1 = arith.constant 0 : index
    %c0_2 = arith.constant 0 : index
    %c0_3 = arith.constant 0 : index
    %0 = vector.load %arg2[%c0, %c0_0, %c0_1, %c0_2, %c0_3] : memref<1x1x36x9x128xbf16, #tpu.memory_space<vmem>>, vector<1x1x8x8x128xbf16>
    %1 = vector.shape_cast %0 : vector<1x1x8x8x128xbf16> to vector<8x8x128xbf16>
    %2 = vector.shape_cast %1 : vector<8x8x128xbf16> to vector<64x128xbf16>
    %c0_4 = arith.constant 0 : index
    %c0_5 = arith.constant 0 : index
    %c9 = arith.constant 9 : index
    %c0_6 = arith.constant 0 : index
    %c0_7 = arith.constant 0 : index
    %3 = vector.load %arg2[%c0_4, %c0_5, %c9, %c0_6, %c0_7] : memref<1x1x36x9x128xbf16, #tpu.memory_space<vmem>>, vector<1x1x8x8x128xbf16>
    %4 = vector.shape_cast %3 : vector<1x1x8x8x128xbf16> to vector<8x8x128xbf16>
    %5 = vector.shape_cast %4 : vector<8x8x128xbf16> to vector<64x128xbf16>
    %c0_8 = arith.constant 0 : index
    %c0_9 = arith.constant 0 : index
    %c0_10 = arith.constant 0 : index
    %c1 = arith.constant 1 : index
    %c0_11 = arith.constant 0 : index
    %6 = vector.load %arg2[%c0_8, %c0_9, %c0_10, %c1, %c0_11] : memref<1x1x36x9x128xbf16, #tpu.memory_space<vmem>>, vector<1x1x8x8x128xbf16>
    %7 = vector.shape_cast %6 : vector<1x1x8x8x128xbf16> to vector<8x8x128xbf16>
    %8 = vector.shape_cast %7 : vector<8x8x128xbf16> to vector<64x128xbf16>
    %c0_12 = arith.constant 0 : index
    %c0_13 = arith.constant 0 : index
    %c18 = arith.constant 18 : index
    %c0_14 = arith.constant 0 : index
    %c0_15 = arith.constant 0 : index
    %9 = vector.load %arg2[%c0_12, %c0_13, %c18, %c0_14, %c0_15] : memref<1x1x36x9x128xbf16, #tpu.memory_space<vmem>>, vector<1x1x8x8x128xbf16>
    %10 = vector.shape_cast %9 : vector<1x1x8x8x128xbf16> to vector<8x8x128xbf16>
    %11 = vector.shape_cast %10 : vector<8x8x128xbf16> to vector<64x128xbf16>
    %c0_16 = arith.constant 0 : index
    %c0_17 = arith.constant 0 : index
    %c27 = arith.constant 27 : index
    %c0_18 = arith.constant 0 : index
    %c0_19 = arith.constant 0 : index
    %12 = vector.load %arg2[%c0_16, %c0_17, %c27, %c0_18, %c0_19] : memref<1x1x36x9x128xbf16, #tpu.memory_space<vmem>>, vector<1x1x8x8x128xbf16>
    %13 = vector.shape_cast %12 : vector<1x1x8x8x128xbf16> to vector<8x8x128xbf16>
    %14 = vector.shape_cast %13 : vector<8x8x128xbf16> to vector<64x128xbf16>
    %c0_20 = arith.constant 0 : index
    %c0_21 = arith.constant 0 : index
    %c18_22 = arith.constant 18 : index
    %c1_23 = arith.constant 1 : index
    %c0_24 = arith.constant 0 : index
    %15 = vector.load %arg2[%c0_20, %c0_21, %c18_22, %c1_23, %c0_24] : memref<1x1x36x9x128xbf16, #tpu.memory_space<vmem>>, vector<1x1x8x8x128xbf16>
    %16 = vector.shape_cast %15 : vector<1x1x8x8x128xbf16> to vector<8x8x128xbf16>
    %17 = vector.shape_cast %16 : vector<8x8x128xbf16> to vector<64x128xbf16>
    %c0_25 = arith.constant 0 : index
    %c0_26 = arith.constant 0 : index
    %c1_27 = arith.constant 1 : index
    %c0_28 = arith.constant 0 : index
    %c0_29 = arith.constant 0 : index
    %18 = vector.load %arg2[%c0_25, %c0_26, %c1_27, %c0_28, %c0_29] : memref<1x1x36x9x128xbf16, #tpu.memory_space<vmem>>, vector<1x1x8x8x128xbf16>
    %19 = vector.shape_cast %18 : vector<1x1x8x8x128xbf16> to vector<8x8x128xbf16>
    %20 = vector.shape_cast %19 : vector<8x8x128xbf16> to vector<64x128xbf16>
    %c0_30 = arith.constant 0 : index
    %c0_31 = arith.constant 0 : index
    %c10 = arith.constant 10 : index
    %c0_32 = arith.constant 0 : index
    %c0_33 = arith.constant 0 : index
    %21 = vector.load %arg2[%c0_30, %c0_31, %c10, %c0_32, %c0_33] : memref<1x1x36x9x128xbf16, #tpu.memory_space<vmem>>, vector<1x1x8x8x128xbf16>
    %22 = vector.shape_cast %21 : vector<1x1x8x8x128xbf16> to vector<8x8x128xbf16>
    %23 = vector.shape_cast %22 : vector<8x8x128xbf16> to vector<64x128xbf16>
    %c0_34 = arith.constant 0 : index
    %c0_35 = arith.constant 0 : index
    %c1_36 = arith.constant 1 : index
    %c1_37 = arith.constant 1 : index
    %c0_38 = arith.constant 0 : index
    %24 = vector.load %arg2[%c0_34, %c0_35, %c1_36, %c1_37, %c0_38] : memref<1x1x36x9x128xbf16, #tpu.memory_space<vmem>>, vector<1x1x8x8x128xbf16>
    %25 = vector.shape_cast %24 : vector<1x1x8x8x128xbf16> to vector<8x8x128xbf16>
    %26 = vector.shape_cast %25 : vector<8x8x128xbf16> to vector<64x128xbf16>
    %27 = tpu.concatenate %2, %5, %8, %11, %14, %17, %20, %23, %26 in 1 : vector<64x128xbf16>, vector<64x128xbf16>, vector<64x128xbf16>, vector<64x128xbf16>, vector<64x128xbf16>, vector<64x128xbf16>, vector<64x128xbf16>, vector<64x128xbf16>, vector<64x128xbf16> -> vector<64x1152xbf16>
    %c0_39 = arith.constant 0 : index
    %c0_40 = arith.constant 0 : index
    %28 = vector.load %arg3[%c0_39, %c0_40] : memref<1152x128xbf16, #tpu.memory_space<vmem>>, vector<1152x128xbf16>
    %cst = arith.constant dense<0.000000e+00> : vector<64x128xf32>
    %29 = tpu.matmul %27, %28, %cst {dimension_numbers = #tpu.dot_dimension_numbers<[1], [0], [0], [1], [0, 0, 1, 1], [], []>} : vector<64x1152xbf16>, vector<1152x128xbf16>, vector<64x128xf32> -> vector<64x128xf32>
    %c0_41 = arith.constant 0 : index
    %c0_42 = arith.constant 0 : index
    %30 = vector.load %arg4[%c0_41, %c0_42] : memref<1x128xf32, #tpu.memory_space<vmem>>, vector<1x128xf32>
    %31 = vector.broadcast %30 : vector<1x128xf32> to vector<64x128xf32>
    %32 = arith.addf %29, %31 : vector<64x128xf32>
    %cst_43 = arith.constant 0.000000e+00 : f32
    %33 = vector.broadcast %cst_43 : f32 to vector<64x128xf32>
    %34 = arith.maximumf %32, %33 : vector<64x128xf32>
    %35 = arith.truncf %34 : vector<64x128xf32> to vector<64x128xbf16>
    %c0_44 = arith.constant 0 : index
    %c0_45 = arith.constant 0 : index
    %36 = vector.load %arg5[%c0_44, %c0_45] : memref<128x128xbf16, #tpu.memory_space<vmem>>, vector<128x128xbf16>
    %cst_46 = arith.constant dense<0.000000e+00> : vector<64x128xf32>
    %37 = tpu.matmul %35, %36, %cst_46 {dimension_numbers = #tpu.dot_dimension_numbers<[1], [0], [0], [1], [0, 0, 1, 1], [], []>} : vector<64x128xbf16>, vector<128x128xbf16>, vector<64x128xf32> -> vector<64x128xf32>
    %c0_47 = arith.constant 0 : index
    %c0_48 = arith.constant 0 : index
    %38 = vector.load %arg6[%c0_47, %c0_48] : memref<1x128xf32, #tpu.memory_space<vmem>>, vector<1x128xf32>
    %39 = vector.broadcast %38 : vector<1x128xf32> to vector<64x128xf32>
    %40 = arith.addf %37, %39 : vector<64x128xf32>
    %cst_49 = arith.constant 0.000000e+00 : f32
    %41 = vector.broadcast %cst_49 : f32 to vector<64x128xf32>
    %42 = arith.maximumf %40, %41 : vector<64x128xf32>
    %43 = vector.shape_cast %42 : vector<64x128xf32> to vector<8x8x128xf32>
    %44 = arith.truncf %43 : vector<8x8x128xf32> to vector<8x8x128xbf16>
    %c0_50 = arith.constant 0 : index
    %c0_51 = arith.constant 0 : index
    %c0_52 = arith.constant 0 : index
    %c0_53 = arith.constant 0 : index
    %c0_54 = arith.constant 0 : index
    %45 = vector.load %arg7[%c0_50, %c0_51, %c0_52, %c0_53, %c0_54] : memref<1x1x8x8x128xbf16, #tpu.memory_space<vmem>>, vector<1x1x8x8x128xbf16>
    %46 = vector.shape_cast %45 : vector<1x1x8x8x128xbf16> to vector<8x8x128xbf16>
    %47 = vector.shape_cast %44 : vector<8x8x128xbf16> to vector<1x1x8x8x128xbf16>
    tpu.vector_store %arg7[%c0_50, %c0_51, %c0_52, %c0_53, %c0_54], %47 {strides = array<i32>} : memref<1x1x8x8x128xbf16, #tpu.memory_space<vmem>>, vector<1x1x8x8x128xbf16>,
    return
  }
  func.func @transform_0(%arg0: i32, %arg1: i32) -> (i32, i32, i32, i32, i32) {
    %c0_i32 = arith.constant 0 : i32
    %c0_i32_0 = arith.constant 0 : i32
    %c0_i32_1 = arith.constant 0 : i32
    %c0_i32_2 = arith.constant 0 : i32
    return %arg0, %arg1, %c0_i32, %c0_i32_0, %c0_i32_1 : i32, i32, i32, i32, i32
  }
  func.func @transform_1(%arg0: i32, %arg1: i32) -> (i32, i32) {
    %c0_i32 = arith.constant 0 : i32
    %c0_i32_0 = arith.constant 0 : i32
    %c0_i32_1 = arith.constant 0 : i32
    return %c0_i32, %c0_i32_0 : i32, i32
  }
  func.func @transform_2(%arg0: i32, %arg1: i32) -> (i32, i32) {
    %c0_i32 = arith.constant 0 : i32
    %c0_i32_0 = arith.constant 0 : i32
    %c0_i32_1 = arith.constant 0 : i32
    return %c0_i32, %c0_i32_0 : i32, i32
  }
  func.func @transform_3(%arg0: i32, %arg1: i32) -> (i32, i32) {
    %c0_i32 = arith.constant 0 : i32
    %c0_i32_0 = arith.constant 0 : i32
    %c0_i32_1 = arith.constant 0 : i32
    return %c0_i32, %c0_i32_0 : i32, i32
  }
  func.func @transform_4(%arg0: i32, %arg1: i32) -> (i32, i32) {
    %c0_i32 = arith.constant 0 : i32
    %c0_i32_0 = arith.constant 0 : i32
    %c0_i32_1 = arith.constant 0 : i32
    return %c0_i32, %c0_i32_0 : i32, i32
  }
  func.func @transform_5(%arg0: i32, %arg1: i32) -> (i32, i32, i32, i32, i32) {
    %c0_i32 = arith.constant 0 : i32
    %c0_i32_0 = arith.constant 0 : i32
    %c0_i32_1 = arith.constant 0 : i32
    %c0_i32_2 = arith.constant 0 : i32
    return %arg0, %arg1, %c0_i32, %c0_i32_0, %c0_i32_1 : i32, i32, i32, i32, i32
  }
}

module attributes {stable_mosaic.version = 11 : i64} {
  func.func @kernel(%arg0: i32, %arg1: i32, %arg2: memref<1x1x10x10x128xbf16, #tpu.memory_space<vmem>>, %arg3: memref<1152x128xbf16, #tpu.memory_space<vmem>>, %arg4: memref<1x128xf32, #tpu.memory_space<vmem>>, %arg5: memref<128x128xbf16, #tpu.memory_space<vmem>>, %arg6: memref<1x128xf32, #tpu.memory_space<vmem>>, %arg7: memref<1x1x8x8x128xbf16, #tpu.memory_space<vmem>>) attributes {dimension_semantics = [#tpu.dimension_semantics<parallel>, #tpu.dimension_semantics<parallel>], iteration_bounds = array<i64: 2, 1>, scalar_prefetch = 0 : i64, scratch_operands = 0 : i64, tpu.core_type = #tpu.core_type<tc>, window_params = [{transform_indices = @transform_0, window_bounds = array<i64: 1, 1, 10, 10, 128>}, {pipeline_mode = #tpu.pipeline_mode<synchronous>, transform_indices = @transform_1, window_bounds = array<i64: 1152, 128>}, {pipeline_mode = #tpu.pipeline_mode<synchronous>, transform_indices = @transform_2, window_bounds = array<i64: 1, 128>}, {pipeline_mode = #tpu.pipeline_mode<synchronous>, transform_indices = @transform_3, window_bounds = array<i64: 128, 128>}, {pipeline_mode = #tpu.pipeline_mode<synchronous>, transform_indices = @transform_4, window_bounds = array<i64: 1, 128>}, {transform_indices = @transform_5, window_bounds = array<i64: 1, 1, 8, 8, 128>}]} {
    %c0 = arith.constant 0 : index
    %c0_0 = arith.constant 0 : index
    %c0_1 = arith.constant 0 : index
    %c0_2 = arith.constant 0 : index
    %c0_3 = arith.constant 0 : index
    %0 = vector.load %arg2[%c0, %c0_0, %c0_1, %c0_2, %c0_3] : memref<1x1x10x10x128xbf16, #tpu.memory_space<vmem>>, vector<1x1x8x8x128xbf16>
    %1 = vector.shape_cast %0 : vector<1x1x8x8x128xbf16> to vector<8x8x128xbf16>
    %2 = vector.shape_cast %1 : vector<8x8x128xbf16> to vector<64x128xbf16>
    %c0_4 = arith.constant 0 : index
    %c0_5 = arith.constant 0 : index
    %c0_6 = arith.constant 0 : index
    %c1 = arith.constant 1 : index
    %c0_7 = arith.constant 0 : index
    %3 = vector.load %arg2[%c0_4, %c0_5, %c0_6, %c1, %c0_7] : memref<1x1x10x10x128xbf16, #tpu.memory_space<vmem>>, vector<1x1x8x8x128xbf16>
    %4 = vector.shape_cast %3 : vector<1x1x8x8x128xbf16> to vector<8x8x128xbf16>
    %5 = vector.shape_cast %4 : vector<8x8x128xbf16> to vector<64x128xbf16>
    %c0_8 = arith.constant 0 : index
    %c0_9 = arith.constant 0 : index
    %c0_10 = arith.constant 0 : index
    %c2 = arith.constant 2 : index
    %c0_11 = arith.constant 0 : index
    %6 = vector.load %arg2[%c0_8, %c0_9, %c0_10, %c2, %c0_11] : memref<1x1x10x10x128xbf16, #tpu.memory_space<vmem>>, vector<1x1x8x8x128xbf16>
    %7 = vector.shape_cast %6 : vector<1x1x8x8x128xbf16> to vector<8x8x128xbf16>
    %8 = vector.shape_cast %7 : vector<8x8x128xbf16> to vector<64x128xbf16>
    %c0_12 = arith.constant 0 : index
    %c0_13 = arith.constant 0 : index
    %c1_14 = arith.constant 1 : index
    %c0_15 = arith.constant 0 : index
    %c0_16 = arith.constant 0 : index
    %9 = vector.load %arg2[%c0_12, %c0_13, %c1_14, %c0_15, %c0_16] : memref<1x1x10x10x128xbf16, #tpu.memory_space<vmem>>, vector<1x1x8x8x128xbf16>
    %10 = vector.shape_cast %9 : vector<1x1x8x8x128xbf16> to vector<8x8x128xbf16>
    %11 = vector.shape_cast %10 : vector<8x8x128xbf16> to vector<64x128xbf16>
    %c0_17 = arith.constant 0 : index
    %c0_18 = arith.constant 0 : index
    %c1_19 = arith.constant 1 : index
    %c1_20 = arith.constant 1 : index
    %c0_21 = arith.constant 0 : index
    %12 = vector.load %arg2[%c0_17, %c0_18, %c1_19, %c1_20, %c0_21] : memref<1x1x10x10x128xbf16, #tpu.memory_space<vmem>>, vector<1x1x8x8x128xbf16>
    %13 = vector.shape_cast %12 : vector<1x1x8x8x128xbf16> to vector<8x8x128xbf16>
    %14 = vector.shape_cast %13 : vector<8x8x128xbf16> to vector<64x128xbf16>
    %c0_22 = arith.constant 0 : index
    %c0_23 = arith.constant 0 : index
    %c1_24 = arith.constant 1 : index
    %c2_25 = arith.constant 2 : index
    %c0_26 = arith.constant 0 : index
    %15 = vector.load %arg2[%c0_22, %c0_23, %c1_24, %c2_25, %c0_26] : memref<1x1x10x10x128xbf16, #tpu.memory_space<vmem>>, vector<1x1x8x8x128xbf16>
    %16 = vector.shape_cast %15 : vector<1x1x8x8x128xbf16> to vector<8x8x128xbf16>
    %17 = vector.shape_cast %16 : vector<8x8x128xbf16> to vector<64x128xbf16>
    %c0_27 = arith.constant 0 : index
    %c0_28 = arith.constant 0 : index
    %c2_29 = arith.constant 2 : index
    %c0_30 = arith.constant 0 : index
    %c0_31 = arith.constant 0 : index
    %18 = vector.load %arg2[%c0_27, %c0_28, %c2_29, %c0_30, %c0_31] : memref<1x1x10x10x128xbf16, #tpu.memory_space<vmem>>, vector<1x1x8x8x128xbf16>
    %19 = vector.shape_cast %18 : vector<1x1x8x8x128xbf16> to vector<8x8x128xbf16>
    %20 = vector.shape_cast %19 : vector<8x8x128xbf16> to vector<64x128xbf16>
    %c0_32 = arith.constant 0 : index
    %c0_33 = arith.constant 0 : index
    %c2_34 = arith.constant 2 : index
    %c1_35 = arith.constant 1 : index
    %c0_36 = arith.constant 0 : index
    %21 = vector.load %arg2[%c0_32, %c0_33, %c2_34, %c1_35, %c0_36] : memref<1x1x10x10x128xbf16, #tpu.memory_space<vmem>>, vector<1x1x8x8x128xbf16>
    %22 = vector.shape_cast %21 : vector<1x1x8x8x128xbf16> to vector<8x8x128xbf16>
    %23 = vector.shape_cast %22 : vector<8x8x128xbf16> to vector<64x128xbf16>
    %c0_37 = arith.constant 0 : index
    %c0_38 = arith.constant 0 : index
    %c2_39 = arith.constant 2 : index
    %c2_40 = arith.constant 2 : index
    %c0_41 = arith.constant 0 : index
    %24 = vector.load %arg2[%c0_37, %c0_38, %c2_39, %c2_40, %c0_41] : memref<1x1x10x10x128xbf16, #tpu.memory_space<vmem>>, vector<1x1x8x8x128xbf16>
    %25 = vector.shape_cast %24 : vector<1x1x8x8x128xbf16> to vector<8x8x128xbf16>
    %26 = vector.shape_cast %25 : vector<8x8x128xbf16> to vector<64x128xbf16>
    %27 = tpu.concatenate %2, %5, %8, %11, %14, %17, %20, %23, %26 in 1 : vector<64x128xbf16>, vector<64x128xbf16>, vector<64x128xbf16>, vector<64x128xbf16>, vector<64x128xbf16>, vector<64x128xbf16>, vector<64x128xbf16>, vector<64x128xbf16>, vector<64x128xbf16> -> vector<64x1152xbf16>
    %c0_42 = arith.constant 0 : index
    %c0_43 = arith.constant 0 : index
    %28 = vector.load %arg3[%c0_42, %c0_43] : memref<1152x128xbf16, #tpu.memory_space<vmem>>, vector<1152x128xbf16>
    %cst = arith.constant dense<0.000000e+00> : vector<64x128xf32>
    %29 = tpu.matmul %27, %28, %cst {dimension_numbers = #tpu.dot_dimension_numbers<[1], [0], [0], [1], [0, 0, 1, 1], [], []>} : vector<64x1152xbf16>, vector<1152x128xbf16>, vector<64x128xf32> -> vector<64x128xf32>
    %c0_44 = arith.constant 0 : index
    %c0_45 = arith.constant 0 : index
    %30 = vector.load %arg4[%c0_44, %c0_45] : memref<1x128xf32, #tpu.memory_space<vmem>>, vector<1x128xf32>
    %31 = vector.broadcast %30 : vector<1x128xf32> to vector<64x128xf32>
    %32 = arith.addf %29, %31 : vector<64x128xf32>
    %cst_46 = arith.constant 0.000000e+00 : f32
    %33 = vector.broadcast %cst_46 : f32 to vector<64x128xf32>
    %34 = arith.maximumf %32, %33 : vector<64x128xf32>
    %35 = arith.truncf %34 : vector<64x128xf32> to vector<64x128xbf16>
    %c0_47 = arith.constant 0 : index
    %c0_48 = arith.constant 0 : index
    %36 = vector.load %arg5[%c0_47, %c0_48] : memref<128x128xbf16, #tpu.memory_space<vmem>>, vector<128x128xbf16>
    %cst_49 = arith.constant dense<0.000000e+00> : vector<64x128xf32>
    %37 = tpu.matmul %35, %36, %cst_49 {dimension_numbers = #tpu.dot_dimension_numbers<[1], [0], [0], [1], [0, 0, 1, 1], [], []>} : vector<64x128xbf16>, vector<128x128xbf16>, vector<64x128xf32> -> vector<64x128xf32>
    %c0_50 = arith.constant 0 : index
    %c0_51 = arith.constant 0 : index
    %38 = vector.load %arg6[%c0_50, %c0_51] : memref<1x128xf32, #tpu.memory_space<vmem>>, vector<1x128xf32>
    %39 = vector.broadcast %38 : vector<1x128xf32> to vector<64x128xf32>
    %40 = arith.addf %37, %39 : vector<64x128xf32>
    %cst_52 = arith.constant 0.000000e+00 : f32
    %41 = vector.broadcast %cst_52 : f32 to vector<64x128xf32>
    %42 = arith.maximumf %40, %41 : vector<64x128xf32>
    %43 = vector.shape_cast %42 : vector<64x128xf32> to vector<8x8x128xf32>
    %44 = arith.truncf %43 : vector<8x8x128xf32> to vector<8x8x128xbf16>
    %c0_53 = arith.constant 0 : index
    %c0_54 = arith.constant 0 : index
    %c0_55 = arith.constant 0 : index
    %c0_56 = arith.constant 0 : index
    %c0_57 = arith.constant 0 : index
    %45 = vector.load %arg7[%c0_53, %c0_54, %c0_55, %c0_56, %c0_57] : memref<1x1x8x8x128xbf16, #tpu.memory_space<vmem>>, vector<1x1x8x8x128xbf16>
    %46 = vector.shape_cast %45 : vector<1x1x8x8x128xbf16> to vector<8x8x128xbf16>
    %47 = vector.shape_cast %44 : vector<8x8x128xbf16> to vector<1x1x8x8x128xbf16>
    tpu.vector_store %arg7[%c0_53, %c0_54, %c0_55, %c0_56, %c0_57], %47 {strides = array<i32>} : memref<1x1x8x8x128xbf16, #tpu.memory_space<vmem>>, vector<1x1x8x8x128xbf16>,
    return
  }
  func.func @transform_0(%arg0: i32, %arg1: i32) -> (i32, i32, i32, i32, i32) {
    %c0_i32 = arith.constant 0 : i32
    %c0_i32_0 = arith.constant 0 : i32
    %c0_i32_1 = arith.constant 0 : i32
    %c0_i32_2 = arith.constant 0 : i32
    return %arg0, %arg1, %c0_i32, %c0_i32_0, %c0_i32_1 : i32, i32, i32, i32, i32
  }
  func.func @transform_1(%arg0: i32, %arg1: i32) -> (i32, i32) {
    %c0_i32 = arith.constant 0 : i32
    %c0_i32_0 = arith.constant 0 : i32
    %c0_i32_1 = arith.constant 0 : i32
    return %c0_i32, %c0_i32_0 : i32, i32
  }
  func.func @transform_2(%arg0: i32, %arg1: i32) -> (i32, i32) {
    %c0_i32 = arith.constant 0 : i32
    %c0_i32_0 = arith.constant 0 : i32
    %c0_i32_1 = arith.constant 0 : i32
    return %c0_i32, %c0_i32_0 : i32, i32
  }
  func.func @transform_3(%arg0: i32, %arg1: i32) -> (i32, i32) {
    %c0_i32 = arith.constant 0 : i32
    %c0_i32_0 = arith.constant 0 : i32
    %c0_i32_1 = arith.constant 0 : i32
    return %c0_i32, %c0_i32_0 : i32, i32
  }
  func.func @transform_4(%arg0: i32, %arg1: i32) -> (i32, i32) {
    %c0_i32 = arith.constant 0 : i32
    %c0_i32_0 = arith.constant 0 : i32
    %c0_i32_1 = arith.constant 0 : i32
    return %c0_i32, %c0_i32_0 : i32, i32
  }
  func.func @transform_5(%arg0: i32, %arg1: i32) -> (i32, i32, i32, i32, i32) {
    %c0_i32 = arith.constant 0 : i32
    %c0_i32_0 = arith.constant 0 : i32
    %c0_i32_1 = arith.constant 0 : i32
    %c0_i32_2 = arith.constant 0 : i32
    return %arg0, %arg1, %c0_i32, %c0_i32_0, %c0_i32_1 : i32, i32, i32, i32, i32
  }
}

</mosaic_0001>

<bundles_post_ra>
// kernel: repvgg_stage_forward.2
= control target key start
LH: loop header
LB: loop body
LE: loop exit
PB: predicated region body
PF: predicated region fallthrough
CT: control target
= control target key end

     0   :  { %s2665_s18 = smov 0   ;;  %s2667_s19 = smov 0   ;;  %s3136_s0 = inlined_call_operand.vmem [shape: bf16[2,1,36,9,128], index: 0, kind: input, shape index: {}]   ;;  %s3137_s1 = inlined_call_operand.vmem [shape: bf16[1152,128], index: 1, kind: input, shape index: {}]   ;;  %s3138_s2 = inlined_call_operand.vmem [shape: f32[1,128], index: 2, kind: input, shape index: {}]   ;;  %s3139_s3 = inlined_call_operand.vmem [shape: bf16[128,128], index: 3, kind: input, shape index: {}]   ;;  %s3140_s4 = inlined_call_operand.vmem [shape: f32[1,128], index: 4, kind: input, shape index: {}]   ;;  %s3141_s5 = inlined_call_operand.vmem [shape: bf16[2,1,8,8,128], index: 5, kind: output, shape index: {}]  }
   0x1   :  { %s2669_s20 = smov 0  }
   0x2 LB: > { %s27_s21 = sadd.s32 1, %s2629_s19  ;;  %p2046_p0 = scmp.ge.s32.totalorder %s2633_s20, 1  ;;  %s2633_s20 = sphi %s2669_s20, %s15_s20   ;;  %s2629_s19 = sphi %s2667_s19, %s3145_s19   ;;  %s2625_s18 = sphi %s2665_s18, %s3144_s18  }
   0x3   : > { %p29_p1 = scmp.ge.s32.totalorder %s27_s21, 2  ;;  %p207_p2 = scmp.lt.s32.totalorder %s2633_s20, 3 }
   0x5   : > { %s3147_s21 = smov (%p29_p1, %s27_s21), 0  ;;  %p208_p3 = pnand %p2046_p0, %p207_p2 }
   0x6   : > { %v2507_v0 = vld [vmem:[%s3137_s1 + $0x40] sm:$0xff] (!%p208_p3)   ;;  %v2511_v4 = vld [vmem:[%s3137_s1 + $0x48] sm:$0xff] (!%p208_p3)   ;;  %v2515_v8 = vld [vmem:[%s3137_s1 + $0x50] sm:$0xff] (!%p208_p3)   ;;  %p243_p4 = scmp.lt.s32.totalorder (!%p208_p3), %s2625_s18, 1  ;;  %vm287_vm0 = vsmask.f32 (!%p208_p3), 3328 }
   0x7   : > { %211 = sbr.rel (%p208_p3) target bundleno = 555 (0x22b), region = 40  ;;  %v2508_v1 = vld [vmem:[%s3137_s1] sm:$0xff] (!%p208_p3)   ;;  %2250 = vmatprep.subr.bf16.mxu0 (!%p208_p3), %v2507_v0  ;;  %v2512_v5 = vld [vmem:[%s3137_s1 + $0x8] sm:$0xff] (!%p208_p3)   ;;  %v2516_v9 = vld [vmem:[%s3137_s1 + $0x10] sm:$0xff] (!%p208_p3)   ;;  %vm288_vm1 = vsmask.f32 (!%p208_p3), 7440 }
   0x8   : > { %v2509_v2 = vld [vmem:[%s3137_s1 + $0xc0] sm:$0xff] (!%p208_p3)   ;;  %2251 = vmatpush3.bf16.msra.mxu0 (!%p208_p3), %v2508_v1  ;;  %v2513_v6 = vld [vmem:[%s3137_s1 + $0xc8] sm:$0xff] (!%p208_p3)   ;;  %v2517_v10 = vld [vmem:[%s3137_s1 + $0xd0] sm:$0xff] (!%p208_p3)  }
   0x9   : > { %v2510_v3 = vld [vmem:[%s3137_s1 + $0x80] sm:$0xff] (!%p208_p3)   ;;  %2290 = vmatprep.subr.bf16.mxu1 (!%p208_p3), %v2509_v2  ;;  %2252 = vmatprep.subr.bf16.mxu0 (!%p208_p3), %v2511_v4  ;;  %v2514_v7 = vld [vmem:[%s3137_s1 + $0x88] sm:$0xff] (!%p208_p3)   ;;  %v2518_v11 = vld [vmem:[%s3137_s1 + $0x90] sm:$0xff] (!%p208_p3)  }
   0xa   : > { %2291 = vmatpush3.bf16.msra.mxu1 (!%p208_p3), %v2510_v3  ;;  %v2519_v12 = vld [vmem:[%s3137_s1 + $0x58] sm:$0xff] (!%p208_p3)   ;;  %v2523_v16 = vld [vmem:[%s3137_s1 + $0x60] sm:$0xff] (!%p208_p3)   ;;  %v2527_v20 = vld [vmem:[%s3137_s1 + $0x68] sm:$0xff] (!%p208_p3)  }
   0xb   : > { %2292 = vmatprep.subr.bf16.mxu1 (!%p208_p3), %v2513_v6  ;;  %v2520_v13 = vld [vmem:[%s3137_s1 + $0x18] sm:$0xff] (!%p208_p3)   ;;  %v2524_v17 = vld [vmem:[%s3137_s1 + $0x20] sm:$0xff] (!%p208_p3)   ;;  %v2528_v21 = vld [vmem:[%s3137_s1 + $0x28] sm:$0xff] (!%p208_p3)  }
   0xc   : > { %2253 = vmatpush3.bf16.msra.mxu0 (!%p208_p3), %v2512_v5  ;;  %v2521_v14 = vld [vmem:[%s3137_s1 + $0xd8] sm:$0xff] (!%p208_p3)   ;;  %v2525_v18 = vld [vmem:[%s3137_s1 + $0xe0] sm:$0xff] (!%p208_p3)   ;;  %v2529_v22 = vld [vmem:[%s3137_s1 + $0xe8] sm:$0xff] (!%p208_p3)  }
   0xd   : > { %2254 = vmatprep.subr.bf16.mxu0 (!%p208_p3), %v2515_v8  ;;  %v2522_v15 = vld [vmem:[%s3137_s1 + $0x98] sm:$0xff] (!%p208_p3)   ;;  %v2526_v19 = vld [vmem:[%s3137_s1 + $0xa0] sm:$0xff] (!%p208_p3)   ;;  %v2530_v23 = vld [vmem:[%s3137_s1 + $0xa8] sm:$0xff] (!%p208_p3)  }
   0xe   : > { %2293 = vmatpush3.bf16.msra.mxu1 %v2514_v7  ;;  %s3149_s18 = smov (!%p243_p4, %s2625_s18), 1  ;;  %v2531_v24 = vld [vmem:[%s3137_s1 + $0x70] sm:$0xff]   ;;  %v2535_v28 = vld [vmem:[%s3137_s1 + $0x78] sm:$0xff]   ;;  %v2541_v40 = vld [vmem:[%s3137_s1 + $0x140] sm:$0xff]  }
   0xf   : > { %2294 = vmatprep.subr.bf16.mxu1 %v2517_v10  ;;  %v2532_v25 = vld [vmem:[%s3137_s1 + $0x30] sm:$0xff]   ;;  %s2482_s9 = smul.u32 288, %s3149_s18  ;;  %v2536_v29 = vld [vmem:[%s3137_s1 + $0x38] sm:$0xff]   ;;  %v2543_v48 = vld [vmem:[%s3137_s1 + $0x100] sm:$0xff]   ;;  %s2226_s26 = sshll.u32 %s3149_s18, 5 }
  0x10   : > { %2255 = vmatpush3.bf16.msra.mxu0 %v2516_v9  ;;  %v2533_v26 = vld [vmem:[%s3137_s1 + $0xf0] sm:$0xff]   ;;  %v2537_v30 = vld [vmem:[%s3137_s1 + $0xf8] sm:$0xff]   ;;  %vm2810_vm2 = vmor %vm287_vm0, %vm288_vm1  ;;  %s260_s28 = scalar_lea.vmem %s3141_s5, %s2226_s26 }
  0x11   : > { %2256 = vmatprep.subr.bf16.mxu0 %v2519_v12  ;;  %v2534_v27 = vld [vmem:[%s3137_s1 + $0xb0] sm:$0xff]   ;;  %s2786_s24 = scalar_lea.vmem %s3136_s0, %s2482_s9  ;;  %v2539_v32 = vld [vmem:[%s3137_s1 + $0xb8] sm:$0xff]   ;;  %v2544_v58 = vld [vmem:[%s3137_s1 + $0x1c0] sm:$0xff]  }
  0x12   : > { %2295 = vmatpush3.bf16.msra.mxu1 %v2518_v11  ;;  %v2538_v31 = vld [vmem:[%s2786_s24 + $0x48] ss:$8 sps:$4 sm:$0xff]   ;;  %v262_v33 = vld [vmem:[%s2786_s24] sm:$0xf]  ;;  %v2801_v42 = vld [vmem:[%s2786_s24 + $0x98] sm:$0xf] }
  0x13   : > { %2296 = vmatprep.subr.bf16.mxu1 %v2521_v14  ;;  %1485 = vmatprep.mubr.bf16.mxu0 %v2538_v31  ;;  %v263_v34 = vld [vmem:[%s2786_s24 + $0x8] sm:$0xf]  ;;  %v291_v35 = vshrl.u32 %v262_v33, 16  ;;  %v294_v36 = vshll.u32 %v262_v33, 16  ;;  %v2798_v41 = vld [vmem:[%s2786_s24 + $0x90] sm:$0xf] }
  0x14   : > { %2257 = vmatpush3.bf16.msra.mxu0 %v2520_v13  ;;  %v305_v37 = vshrl.u32 %v263_v34, 16  ;;  %v308_v38 = vshll.u32 %v263_v34, 16  ;;  %v2106_v39 = vcombine.low %v262_v33, %v263_v34  ;;  %v2118_v47 = vcombine.low %v2798_v41, %v2801_v42  ;;  %v279_v49 = vld [vmem:[%s2786_s24 + $0x4] sm:$0x1]  ;;  %v280_v50 = vld [vmem:[%s2786_s24 + $0xc] sm:$0x1] }
  0x15   : > { %2258 = vmatprep.subr.bf16.mxu0 %v2523_v16  ;;  %v293_v43 = vrot.slane %v291_v35, 4  ;;  %v296_v44 = vrot.slane %v294_v36, 5  ;;  %v300_v54 = vshll.u32 %v279_v49, 16  ;;  %v314_v57 = vshll.u32 %v280_v50, 16  ;;  %v2545_v61 = vld [vmem:[%s3137_s1 + $0x180] sm:$0xff]   ;;  %v2546_v62 = vld [vmem:[%s3137_s1 + $0x148] sm:$0xff]  }
  0x16   : > { %2297 = vmatpush3.bf16.msra.mxu1 %v2522_v15  ;;  %v307_v45 = vrot.slane %v305_v37, 4  ;;  %v310_v46 = vrot.slane %v308_v38, 5  ;;  %1550 = vmatprep.mubr.bf16.mxu1 %v2118_v47  ;;  %v2547_v1 = vld [vmem:[%s3137_s1 + $0x108] sm:$0xff]   ;;  %v2549_v4 = vld [vmem:[%s2786_s24 + $0x58] ss:$8 sps:$4 sm:$0xff]   ;;  %v429_v5 = vshrl.u32 %v2798_v41, 16 }
  0x17   : > { %2298 = vmatprep.subr.bf16.mxu1 %v2525_v18  ;;  %v297_v51 = vor.u32 %v296_v44, %v293_v43  ;;  %v302_v59 = vrot.slane %v300_v54, 5  ;;  %v316_v60 = vrot.slane %v314_v57, 5  ;;  %v2548_v3 = vld [vmem:[%s3137_s1 + $0x1c8] sm:$0xff]   ;;  %v264_v7 = vld [vmem:[%s2786_s24 + $0x10] sm:$0xf]  ;;  %v432_v13 = vshll.u32 %v2798_v41, 16 }
  0x18   : > { %2259 = vmatpush3.bf16.msra.mxu0 %v2524_v17  ;;  %v311_v52 = vor.u32 %v310_v46, %v307_v45  ;;  %v2550_v6 = vld [vmem:[%s3137_s1 + $0x188] sm:$0xff]   ;;  %v265_v8 = vld [vmem:[%s2786_s24 + $0x18] sm:$0xf]  ;;  %v319_v9 = vshrl.u32 %v264_v7, 16  ;;  %v322_v10 = vshll.u32 %v264_v7, 16  ;;  %v2552_v15 = vld [vmem:[%s3137_s1 + $0x150] sm:$0xff]  }
  0x19   : > { %2260 = vmatprep.subr.bf16.mxu0 %v2527_v20  ;;  %v298_v53 = vrot.slane %v297_v51, 4  ;;  %v333_v11 = vshrl.u32 %v265_v8, 16  ;;  %v336_v12 = vshll.u32 %v265_v8, 16  ;;  %v2107_v14 = vcombine.low %v264_v7, %v265_v8  ;;  %v2845_v16 = vld [vmem:[%s2786_s24 + $0xa0] sm:$0xf]  ;;  %v2555_v37 = vld [vmem:[%s3137_s1 + $0x1d0] sm:$0xff]  }
  0x1a   : > { %2299 = vmatpush3.bf16.msra.mxu1 %v2526_v19  ;;  %v312_v56 = vrot.slane %v311_v52, 4  ;;  %v321_v17 = vrot.slane %v319_v9, 4  ;;  %v324_v18 = vrot.slane %v322_v10, 5  ;;  %v282_v31 = vld [vmem:[%s2786_s24 + $0x1c] sm:$0x1]  ;;  %v457_v36 = vshrl.u32 %v2845_v16, 16 }
  0x1b   : > { %2300 = vmatprep.subr.bf16.mxu1 %v2529_v22  ;;  %v303_v63 = vsel %vm2810_vm2, %v298_v53, %v302_v59  ;;  %v335_v19 = vrot.slane %v333_v11, 4  ;;  %v338_v20 = vrot.slane %v336_v12, 5  ;;  %v342_v35 = vshll.u32 %v282_v31, 16  ;;  %v2557_v41 = vld [vmem:[%s3137_s1 + $0x158] sm:$0xff]   ;;  %v2560_v49 = vld [vmem:[%s2786_s24 + $0x68] ss:$8 sps:$4 sm:$0xff]  }
  0x1c   : > { %2261 = vmatpush3.bf16.msra.mxu0 %v2528_v21  ;;  %v317_v0 = vsel %vm2810_vm2, %v312_v56, %v316_v60  ;;  %v2848_v21 = vld [vmem:[%s2786_s24 + $0xa8] sm:$0xf]  ;;  %v2558_v45 = vld [vmem:[%s3137_s1 + $0x118] sm:$0xff]   ;;  %v266_v52 = vld [vmem:[%s2786_s24 + $0x20] sm:$0xf]  ;;  %v459_v11 = vrot.slane %v457_v36, 4 }
  0x1d   : > { %2262 = vmatprep.subr.bf16.mxu0 %v2531_v24  ;;  %v2114_v2 = vcombine.low %v303_v63, %v317_v0  ;;  %v2119_v22 = vcombine.low %v2845_v16, %v2848_v21  ;;  %v281_v24 = vld [vmem:[%s2786_s24 + $0x14] sm:$0x1]  ;;  %v471_v46 = vshrl.u32 %v2848_v21, 16  ;;  %v474_v50 = vshll.u32 %v2848_v21, 16  ;;  %v2561_v51 = vld [vmem:[%s3137_s1 + $0x198] sm:$0xff]  }
  0x1e   : > { %2301 = vmatpush3.bf16.msra.mxu1 %v2530_v23  ;;  %v2554_v23 = vld [vmem:[%s3137_s1 + $0x110] sm:$0xff]   ;;  %v328_v33 = vshll.u32 %v281_v24, 16  ;;  %v267_v54 = vld [vmem:[%s2786_s24 + $0x28] sm:$0xf]  ;;  %v347_v56 = vshrl.u32 %v266_v52, 16  ;;  %v350_v57 = vshll.u32 %v266_v52, 16 }
  0x1f   : > { %2302 = vmatprep.subr.bf16.mxu1 %v2533_v26  ;;  %v339_v26 = vor.u32 %v338_v20, %v335_v19  ;;  %v364_v59 = vshll.u32 %v267_v54, 16  ;;  %v2108_v60 = vcombine.low %v266_v52, %v267_v54  ;;  %v283_v9 = vld [vmem:[%s2786_s24 + $0x24] sm:$0x1]  ;;  %v2065_v52 = vld [vmem:[%s2786_s24 + $0xc8] sm:$0xf]  ;;  %v2606_v55 = vld [vmem:[%s3139_s3 + $0x18] sm:$0xff]  }
  0x20   : > { %2263 = vmatpush3.bf16.msra.mxu0 %v2532_v25  ;;  %v325_v25 = vor.u32 %v324_v18, %v321_v17  ;;  %v330_v38 = vrot.slane %v328_v33, 5  ;;  %v349_v63 = vrot.slane %v347_v56, 4  ;;  %v352_v0 = vrot.slane %v350_v57, 5  ;;  %v2567_v24 = vld [vmem:[%s3137_s1 + $0x1a0] sm:$0xff]   ;;  %v2570_v33 = vld [vmem:[%s3137_s1 + $0x1e8] sm:$0xff]  }
  0x21   : > { %2264 = vmatprep.subr.bf16.mxu0 %v2535_v28  ;;  %v434_v28 = vrot.slane %v432_v13, 5  ;;  %v340_v34 = vrot.slane %v339_v26, 4  ;;  %v284_v13 = vld [vmem:[%s2786_s24 + $0x2c] sm:$0x1]  ;;  %v473_v17 = vrot.slane %v471_v46, 4  ;;  %v476_v18 = vrot.slane %v474_v50, 5 }
  0x22   : > { %2303 = vmatpush3.bf16.msra.mxu1 %v2534_v27  ;;  %v431_v27 = vrot.slane %v429_v5, 4  ;;  %v366_v5 = vrot.slane %v364_v59, 5  ;;  %v353_v10 = vor.u32 %v352_v0, %v349_v63  ;;  %v370_v20 = vshll.u32 %v284_v13, 16  ;;  %v2578_v13 = vld [vmem:[%s3137_s1 + $0x1b0] sm:$0xff]  }
  0x23   : > { %2304 = vmatprep.subr.bf16.mxu1 %v2537_v30  ;;  %v446_v30 = vshll.u32 %v2801_v42, 16 }
  0x24   : > { %2265 = vmatpush3.bf16.msra.mxu0 %v2536_v29  ;;  %v443_v29 = vshrl.u32 %v2801_v42, 16  ;;  %v460_v42 = vshll.u32 %v2845_v16, 16  ;;  %v435_v53 = vor.u32 %v434_v28, %v431_v27  ;;  %v2566_v16 = vld [vmem:[%s3137_s1 + $0x1e0] sm:$0xff]   ;;  %v354_v19 = vrot.slane %v353_v10, 4  ;;  %v2568_v27 = vld [vmem:[%s3137_s1 + $0x168] sm:$0xff]  }
  0x25   : > { %2330 = vmatprep.subr.bf16.mxu0 %v2541_v40  ;;  %v2556_v40 = vld [vmem:[%s3137_s1 + $0x190] sm:$0xff]   ;;  %v448_v7 = vrot.slane %v446_v30, 5  ;;  %v2569_v30 = vld [vmem:[%s3137_s1 + $0x128] sm:$0xff]  }
  0x26   : > { %2305 = vmatpush3.bf16.msra.mxu1 %v2539_v32  ;;  %v326_v32 = vrot.slane %v325_v25, 4  ;;  %v462_v12 = vrot.slane %v460_v42, 5 }
  0x27   : > { %1486 = vmatmul.mubr.bf16.vlgmr.msra.gmra.mrb[0].mxu0 %v2106_v39  ;;  %2370 = vmatprep.subr.bf16.mxu1 %v2544_v58  ;;  %v344_v39 = vrot.slane %v342_v35, 5  ;;  %v361_v58 = vshrl.u32 %v267_v54, 16 }
  0x28   : > { %2331 = vmatpush3.bf16.msra.mxu0 %v2543_v48  ;;  %1493 = vmatprep.mubr.bf16.mxu0 %v2549_v4  ;;  %v331_v43 = vsel %vm2810_vm2, %v326_v32, %v330_v38  ;;  %v2559_v48 = vld [vmem:[%s3137_s1 + $0x1d8] sm:$0xff]   ;;  %v268_v38 = vld [vmem:[%s2786_s24 + $0x30] sm:$0xf] }
  0x29   : > { %2332 = vmatprep.subr.bf16.mxu0 %v2546_v62  ;;  %1551 = vmatmul.mubr.bf16.vlgmr.msra.gmra.mrb[0].mxu1 %v2114_v2  ;;  %v345_v44 = vsel %vm2810_vm2, %v340_v34, %v344_v39  ;;  %v2565_v62 = vld [vmem:[%s3137_s1 + $0x120] sm:$0xff]   ;;  %v2898_v2 = vld [vmem:[%s2786_s24 + $0xb8] sm:$0xf]  ;;  %v363_v4 = vrot.slane %v361_v58, 4  ;;  %v463_v39 = vor.u32 %v462_v12, %v459_v11  ;;  %v378_v42 = vshll.u32 %v268_v38, 16 }
  0x2a   : > { %2371 = vmatpush3.bf16.msra.mxu1 %v2545_v61  ;;  %1558 = vmatprep.mubr.bf16.mxu1 %v2119_v22  ;;  %v2115_v47 = vcombine.low %v331_v43, %v345_v44  ;;  %v2563_v61 = vld [vmem:[%s3137_s1 + $0x160] sm:$0xff]   ;;  %v499_v31 = vshrl.u32 %v2898_v2, 16  ;;  %v502_v36 = vshll.u32 %v2898_v2, 16  ;;  %v477_v43 = vor.u32 %v476_v18, %v473_v17 }
  0x2b   : > { %2372 = vmatprep.subr.bf16.mxu1 %v2548_v3  ;;  %v445_v3 = vrot.slane %v443_v29, 4  ;;  %v2571_v34 = vld [vmem:[%s2786_s24 + $0x78] ss:$8 sps:$4 sm:$0xff]   ;;  %v380_v50 = vrot.slane %v378_v42, 5  ;;  %v2945_v57 = vrot.slane %v463_v39, 4  ;;  %v527_v17 = vshrl.u32 %v2065_v52, 16 }
  0x2c   : > { %2333 = vmatpush3.bf16.msra.mxu0 %v2547_v1  ;;  %v2895_v1 = vld [vmem:[%s2786_s24 + $0xb0] sm:$0xf]  ;;  %v2952_v0 = vrot.slane %v499_v31, 4  ;;  %v2587_v42 = vld [vmem:[%s3137_s1 + $0x208] sm:$0xff]  }
  0x2d   : > { %2334 = vmatprep.subr.bf16.mxu0 %v2552_v15  ;;  %v2120_v8 = vcombine.low %v2895_v1, %v2898_v2  ;;  %v367_v15 = vor.u32 %v366_v5, %v363_v4  ;;  %v485_v25 = vshrl.u32 %v2895_v1, 16  ;;  %v488_v28 = vshll.u32 %v2895_v1, 16  ;;  %v286_v1 = vld [vmem:[%s2786_s24 + $0x3c] sm:$0x1]  ;;  %v2577_v4 = vld [vmem:[%s3137_s1 + $0x1f0] sm:$0xff]  }
  0x2e   : > { %2373 = vmatpush3.bf16.msra.mxu1 %v2550_v6  ;;  %v2900_v6 = vrot.slane %v435_v53, 4  ;;  %v449_v35 = vor.u32 %v448_v7, %v445_v3  ;;  %v2958_v5 = vrot.slane %v502_v36, 5  ;;  %v529_v31 = vrot.slane %v527_v17, 4 }
  0x2f   : > { %1494 = vmatmul.mubr.bf16.gmra.mrb[4].mxu0 %v2107_v14  ;;  %2374 = vmatprep.subr.bf16.mxu1 %v2555_v37  ;;  %v356_v14 = vshll.u32 %v283_v9, 16  ;;  %v368_v22 = vrot.slane %v367_v15, 4  ;;  %v2572_v37 = vld [vmem:[%s3137_s1 + $0x1a8] sm:$0xff]   ;;  %v2947_v58 = vrot.slane %v485_v25, 4  ;;  %v490_v63 = vrot.slane %v488_v28, 5  ;;  %v2584_v28 = vld [vmem:[%s3137_s1 + $0x200] sm:$0xff]  }
  0x30   : > { %2335 = vmatpush3.bf16.msra.mxu0 %v2554_v23  ;;  %1501 = vmatprep.mubr.bf16.mxu0 %v2560_v49  ;;  %v372_v23 = vrot.slane %v370_v20, 5  ;;  %v2943_v53 = vrot.slane %v449_v35, 4  ;;  %v398_v9 = vshll.u32 %v286_v1, 16  ;;  %v530_v20 = vshll.u32 %v2065_v52, 16  ;;  %v2583_v35 = vld [vmem:[%s2786_s24 + $0xd8] ss:$8 sps:$4 sm:$0xff]  }
  0x31   : > { %2336 = vmatprep.subr.bf16.mxu0 %v2557_v41  ;;  %1559 = vmatmul.mubr.bf16.gmra.mrb[4].mxu1 %v2115_v47  ;;  %v358_v21 = vrot.slane %v356_v14, 5  ;;  %v375_v41 = vshrl.u32 %v268_v38, 16  ;;  %v2574_v47 = vld [vmem:[%s3137_s1 + $0x170] sm:$0xff]  }
  0x32   : > { %2375 = vmatpush3.bf16.msra.mxu1 %v2556_v40  ;;  %1566 = vmatprep.mubr.bf16.mxu1 %v2120_v8  ;;  %v373_v29 = vsel %vm2810_vm2, %v368_v22, %v372_v23  ;;  %v269_v40 = vld [vmem:[%s2786_s24 + $0x38] sm:$0xf]  ;;  %v400_v12 = vrot.slane %v398_v9, 5  ;;  %v2074_v23 = vld [vmem:[%s2786_s24 + $0x94] sm:$0x1] }
  0x33   : > { %2376 = vmatprep.subr.bf16.mxu1 %v2559_v48  ;;  %v359_v26 = vsel %vm2810_vm2, %v354_v19, %v358_v21  ;;  %v389_v44 = vshrl.u32 %v269_v40, 16  ;;  %v2109_v46 = vcombine.low %v268_v38, %v269_v40  ;;  %v2576_v48 = vld [vmem:[%s3137_s1 + $0x130] sm:$0xff]   ;;  %v377_v49 = vrot.slane %v375_v41, 4  ;;  %v2580_v19 = vld [vmem:[%s3137_s1 + $0x138] sm:$0xff]  }
  0x34   : > { %2337 = vmatpush3.bf16.msra.mxu0 %v2558_v45  ;;  %v2116_v32 = vcombine.low %v359_v26, %v373_v29  ;;  %v392_v45 = vshll.u32 %v269_v40, 16  ;;  %v2581_v22 = vld [vmem:[%s3137_s1 + $0x1f8] sm:$0xff]   ;;  %v438_v25 = vshll.u32 %v2074_v23, 16  ;;  %v491_v38 = vor.u32 %v490_v63, %v2947_v58  ;;  %v2996_v40 = vld [vmem:[%s2786_s24 + $0x8] sm:$0xf]  ;;  %v2594_v23 = vld [vmem:[%s3137_s1 + $0x220] sm:$0xff]  }
  0x35   : > { %2338 = vmatprep.subr.bf16.mxu0 %v2563_v61  ;;  %v391_v54 = vrot.slane %v389_v44, 4  ;;  %v381_v61 = vor.u32 %v380_v50, %v377_v49  ;;  %v2582_v26 = vld [vmem:[%s3137_s1 + $0x1b8] sm:$0xff]   ;;  %v2999_v41 = vld [vmem:[%s2786_s24 + $0x10] sm:$0xf]  ;;  %v2076_v44 = vld [vmem:[%s2786_s24 + $0xa4] sm:$0x1] }
  0x36   : > { %2377 = vmatpush3.bf16.msra.mxu1 %v2561_v51  ;;  %v2064_v51 = vld [vmem:[%s2786_s24 + $0xc0] sm:$0xf]  ;;  %v394_v56 = vrot.slane %v392_v45, 5  ;;  %v2077_v45 = vld [vmem:[%s2786_s24 + $0xac] sm:$0x1] }
  0x37   : > { %1502 = vmatmul.mubr.bf16.gmra.mrb[8].mxu0 %v2108_v60  ;;  %2378 = vmatprep.subr.bf16.mxu1 %v2566_v16  ;;  %v2121_v59 = vcombine.low %v2064_v51, %v2065_v52  ;;  %v285_v60 = vld [vmem:[%s2786_s24 + $0x34] sm:$0x1]  ;;  %v513_v7 = vshrl.u32 %v2064_v51, 16  ;;  %v382_v8 = vrot.slane %v381_v61, 4  ;;  %v516_v14 = vshll.u32 %v2064_v51, 16  ;;  %v2579_v16 = vld [vmem:[%s3137_s1 + $0x178] sm:$0xff]  }
  0x38   : > { %2339 = vmatpush3.bf16.msra.mxu0 %v2565_v62  ;;  %1509 = vmatprep.mubr.bf16.mxu0 %v2571_v34  ;;  %v2950_v62 = vrot.slane %v477_v43, 4  ;;  %v384_v2 = vshll.u32 %v285_v60, 16  ;;  %v395_v3 = vor.u32 %v394_v56, %v391_v54  ;;  %v2589_v51 = vld [vmem:[%s3137_s1 + $0x210] sm:$0xff]   ;;  %v2590_v52 = vld [vmem:[%s2786_s24 + $0x60] ss:$8 sps:$4 sm:$0xff]   ;;  %v505_v56 = vor.u32 %v2958_v5, %v2952_v0 }
  0x39   : > { %2340 = vmatprep.subr.bf16.mxu0 %v2568_v27  ;;  %1567 = vmatmul.mubr.bf16.gmra.mrb[8].mxu1 %v2116_v32  ;;  %v2984_v29 = vrot.slane %v513_v7, 4  ;;  %v440_v32 = vrot.slane %v438_v25, 5  ;;  %v2085_v54 = vld [vmem:[%s2786_s24 + $0x20] sm:$0xf]  ;;  %v2078_v5 = vld [vmem:[%s2786_s24 + $0xb4] sm:$0x1] }
  0x3a   : > { %2379 = vmatpush3.bf16.msra.mxu1 %v2567_v24  ;;  %1574 = vmatprep.mubr.bf16.mxu1 %v2121_v59  ;;  %v386_v10 = vrot.slane %v384_v2, 5  ;;  %v396_v11 = vrot.slane %v395_v3, 4  ;;  %v2075_v24 = vld [vmem:[%s2786_s24 + $0x9c] sm:$0x1]  ;;  %v2588_v3 = vld [vmem:[%s2786_s24 + $0xe8] ss:$8 sps:$4 sm:$0xff]  }
  0x3b   : > { %2380 = vmatprep.subr.bf16.mxu1 %v2570_v33  ;;  %v452_v27 = vshll.u32 %v2075_v24, 16  ;;  %v532_v33 = vrot.slane %v530_v20, 5  ;;  %v441_v36 = vsel %vm2810_vm2, %v2900_v6, %v440_v32  ;;  %v2130_v6 = vcombine.low %v2996_v40, %v2999_v41  ;;  %v2087_v32 = vld [vmem:[%s2786_s24 + $0x30] sm:$0xf] }
  0x3c   : > { %2341 = vmatpush3.bf16.msra.mxu0 %v2569_v30  ;;  %v387_v15 = vsel %vm2810_vm2, %v382_v8, %v386_v10  ;;  %v401_v18 = vsel %vm2810_vm2, %v396_v11, %v400_v12  ;;  %v518_v30 = vrot.slane %v516_v14, 5  ;;  %v612_v0 = vshll.u32 %v2085_v54, 16  ;;  %v2079_v10 = vld [vmem:[%s2786_s24 + $0xbc] sm:$0x1] }
  0x3d   : > { %2342 = vmatprep.subr.bf16.mxu0 %v2574_v47  ;;  %v2117_v21 = vcombine.low %v387_v15, %v401_v18  ;;  %v454_v34 = vrot.slane %v452_v27, 5  ;;  %v480_v47 = vshll.u32 %v2077_v45, 16  ;;  %v533_v59 = vor.u32 %v532_v33, %v529_v31  ;;  %v2592_v15 = vld [vmem:[%s3137_s1 + $0x218] sm:$0xff]  }
  0x3e   : > { %2381 = vmatpush3.bf16.msra.mxu1 %v2572_v37  ;;  %v2585_v37 = vld [vmem:[%s2786_s24 + $0x50] ss:$8 sps:$4 sm:$0xff]   ;;  %v519_v58 = vor.u32 %v518_v30, %v2984_v29  ;;  %v494_v11 = vshll.u32 %v2078_v5, 16  ;;  %v614_v12 = vrot.slane %v612_v0, 5  ;;  %v508_v14 = vshll.u32 %v2079_v10, 16 }
  0x3f   : > { %1510 = vmatmul.mubr.bf16.gmra.mrb[12].mxu0 %v2109_v46  ;;  %2382 = vmatprep.subr.bf16.mxu1 %v2577_v4  ;;  %v455_v39 = vsel %vm2810_vm2, %v2943_v53, %v454_v34  ;;  %v466_v46 = vshll.u32 %v2076_v44, 16  ;;  %v482_v50 = vrot.slane %v480_v47, 5  ;;  %v2084_v53 = vld [vmem:[%s2786_s24 + $0x18] sm:$0xf]  ;;  %v609_v4 = vshrl.u32 %v2085_v54, 16 }
  0x40   : > { %2343 = vmatpush3.bf16.msra.mxu0 %v2576_v48  ;;  %v2126_v43 = vcombine.low %v441_v36, %v455_v39  ;;  %v492_v48 = vrot.slane %v491_v38, 4  ;;  %v595_v63 = vshrl.u32 %v2084_v53, 16  ;;  %v598_v1 = vshll.u32 %v2084_v53, 16  ;;  %v2595_v27 = vld [vmem:[%s2786_s24 + $0x70] ss:$8 sps:$4 sm:$0xff]  }
  0x41   : > { %2344 = vmatprep.subr.bf16.mxu0 %v2579_v16  ;;  %1575 = vmatmul.mubr.bf16.gmra.mrb[12].mxu1 %v2117_v21  ;;  %v468_v49 = vrot.slane %v466_v46, 5  ;;  %v483_v61 = vsel %vm2810_vm2, %v2950_v62, %v482_v50  ;;  %v2131_v9 = vcombine.low %v2084_v53, %v2085_v54  ;;  %v496_v16 = vrot.slane %v494_v11, 5  ;;  %v2593_v31 = vld [vmem:[%s2786_s24 + $0xf8] ss:$8 sps:$4 sm:$0xff]  }
  0x42   : > { %2383 = vmatpush3.bf16.msra.mxu1 %v2578_v13  ;;  %1680 = vmatprep.mubr.bf16.mxu1 %v2585_v37  ;;  %v597_v7 = vrot.slane %v595_v63, 4  ;;  %v600_v8 = vrot.slane %v598_v1, 5  ;;  %v506_v13 = vrot.slane %v505_v56, 4  ;;  %v520_v17 = vrot.slane %v519_v58, 4  ;;  %v2080_v37 = vld [vmem:[%s2786_s24 + $0xc4] sm:$0x1] }
  0x43   : > { %2384 = vmatprep.subr.bf16.mxu1 %v2581_v22  ;;  %1615 = vmatprep.mubr.bf16.mxu0 %v2126_v43  ;;  %v469_v60 = vsel %vm2810_vm2, %v2945_v57, %v468_v49  ;;  %v611_v57 = vrot.slane %v609_v4, 4  ;;  %v534_v18 = vrot.slane %v533_v59, 4  ;;  %v567_v20 = vshrl.u32 %v2996_v40, 16  ;;  %v2600_v58 = vld [vmem:[%s2786_s24 + $0x80] ss:$8 sps:$4 sm:$0xff]  }
  0x44   : > { %2345 = vmatpush3.bf16.msra.mxu0 %v2580_v19  ;;  %v2127_v2 = vcombine.low %v469_v60, %v483_v61  ;;  %v601_v62 = vor.u32 %v600_v8, %v597_v7  ;;  %v510_v19 = vrot.slane %v508_v14, 5  ;;  %v497_v22 = vsel %vm2810_vm2, %v492_v48, %v496_v16  ;;  %v2088_v60 = vld [vmem:[%s2786_s24 + $0x38] sm:$0xf]  ;;  %v2089_v61 = vld [vmem:[%s2786_s24 + $0x40] sm:$0xf] }
  0x45   : > { %2434 = vmatprep.subr.bf16.mxu0 %v2584_v28  ;;  %v615_v21 = vor.u32 %v614_v12, %v611_v57  ;;  %v570_v24 = vshll.u32 %v2996_v40, 16  ;;  %v569_v29 = vrot.slane %v567_v20, 4  ;;  %v640_v36 = vshll.u32 %v2087_v32, 16  ;;  %v2597_v40 = vld [vmem:[%s3137_s1 + $0x228] sm:$0xff]   ;;  %v2602_v14 = vld [vmem:[%s3137_s1 + $0x238] sm:$0xff]  }
  0x46   : > { %2385 = vmatpush3.bf16.msra.mxu1 %v2582_v26  ;;  %v3036_v25 = vrot.slane %v601_v62, 4  ;;  %v511_v26 = vsel %vm2810_vm2, %v506_v13, %v510_v19  ;;  %v522_v43 = vshll.u32 %v2080_v37, 16  ;;  %v581_v47 = vshrl.u32 %v2999_v41, 16  ;;  %v2598_v1 = vld [vmem:[%s2786_s24 + $0x108] ss:$8 sps:$4 sm:$0xff]  }
  0x47   : > { %1616 = vmatmul.mubr.bf16.vlgmr.msra.gmra.mrb[16].mxu0 %v2583_v35  ;;  %v2128_v30 = vcombine.low %v497_v22, %v511_v26  ;;  %v637_v35 = vshrl.u32 %v2087_v32, 16  ;;  %v3045_v38 = vrot.slane %v615_v21, 4  ;;  %v642_v49 = vrot.slane %v640_v36, 5  ;;  %v2098_v8 = vld [vmem:[%s2786_s24 + $0xc] sm:$0x1] }
  0x48   : > { %2435 = vmatpush3.bf16.msra.mxu0 %v2584_v28  ;;  %1623 = vmatprep.mubr.bf16.mxu0 %v2127_v2  ;;  %v2086_v28 = vld [vmem:[%s2786_s24 + $0x28] sm:$0xf]  ;;  %v524_v50 = vrot.slane %v522_v43, 5  ;;  %v583_v54 = vrot.slane %v581_v47, 4  ;;  %v2599_v2 = vld [vmem:[%s3137_s1 + $0x230] sm:$0xff]   ;;  %v654_v4 = vshll.u32 %v2088_v60, 16  ;;  %v2133_v7 = vcombine.low %v2088_v60, %v2089_v61 }
  0x49   : > { %1681 = vmatmul.mubr.bf16.vlgmr.msra.gmra.mrb[16].mxu1 %v2130_v6  ;;  %2436 = vmatprep.subr.bf16.mxu0 %v2587_v42  ;;  %v623_v33 = vshrl.u32 %v2086_v28, 16  ;;  %v626_v34 = vshll.u32 %v2086_v28, 16  ;;  %v2132_v39 = vcombine.low %v2086_v28, %v2087_v32  ;;  %v572_v6 = vrot.slane %v570_v24, 5  ;;  %v2101_v19 = vld [vmem:[%s2786_s24 + $0x24] sm:$0x1] }
  0x4a   : > { %1688 = vmatprep.mubr.bf16.mxu1 %v2590_v52  ;;  %v639_v48 = vrot.slane %v637_v35, 4  ;;  %v525_v56 = vsel %vm2810_vm2, %v520_v17, %v524_v50  ;;  %v665_v0 = vshrl.u32 %v2089_v61, 16  ;;  %v668_v5 = vshll.u32 %v2089_v61, 16  ;;  %v2103_v24 = vld [vmem:[%s2786_s24 + $0x34] sm:$0x1]  ;;  %v2604_v61 = vld [vmem:[%s3139_s3 + $0x8] sm:$0xff]  }
  0x4b   : > { %v625_v44 = vrot.slane %v623_v33, 4  ;;  %v628_v45 = vrot.slane %v626_v34, 5  ;;  %v573_v53 = vor.u32 %v572_v6, %v569_v29  ;;  %v656_v12 = vrot.slane %v654_v4, 5  ;;  %v2105_v36 = vld [vmem:[%s2786_s24 + $0x44] sm:$0x1] }
  0x4c   : > { %2437 = vmatpush3.bf16.msra.mxu0 %v2587_v42  ;;  %v2081_v42 = vld [vmem:[%s2786_s24 + $0xcc] sm:$0x1]  ;;  %v643_v11 = vor.u32 %v642_v49, %v639_v48  ;;  %v667_v13 = vrot.slane %v665_v0, 4  ;;  %v576_v62 = vshll.u32 %v2098_v8, 16  ;;  %v670_v16 = vrot.slane %v668_v5, 5 }
  0x4d   : > { %2438 = vmatprep.subr.bf16.mxu0 %v2589_v51  ;;  %v536_v46 = vshll.u32 %v2081_v42, 16  ;;  %v629_v63 = vor.u32 %v628_v45, %v625_v44  ;;  %v574_v10 = vrot.slane %v573_v53, 4  ;;  %v618_v22 = vshll.u32 %v2101_v19, 16 }
  0x4e   : > { %v578_v21 = vrot.slane %v576_v62, 5  ;;  %v644_v35 = vrot.slane %v643_v11, 4  ;;  %v671_v45 = vor.u32 %v670_v16, %v667_v13  ;;  %v674_v48 = vshll.u32 %v2105_v36, 16 }
  0x4f   : > { %1624 = vmatmul.mubr.bf16.gmra.mrb[20].mxu0 %v2588_v3  ;;  %v538_v52 = vrot.slane %v536_v46, 5  ;;  %v651_v3 = vshrl.u32 %v2088_v60, 16  ;;  %v620_v33 = vrot.slane %v618_v22, 5  ;;  %v2603_v60 = vld [vmem:[%s3139_s3] sm:$0xff]  }
  0x50   : > { %2439 = vmatpush3.bf16.msra.mxu0 %v2589_v51  ;;  %1631 = vmatprep.mubr.bf16.mxu0 %v2128_v30  ;;  %v584_v51 = vshll.u32 %v2999_v41, 16  ;;  %v630_v30 = vrot.slane %v629_v63, 4  ;;  %v579_v32 = vsel %vm2810_vm2, %v574_v10, %v578_v21  ;;  %v672_v53 = vrot.slane %v671_v45, 4  ;;  %v2605_v63 = vld [vmem:[%s3139_s3 + $0x10] sm:$0xff]   ;;  %v2142_v10 = vld [vmem:[%s3138_s2] ss:$0 sm:$0xff] }
  0x51   : > { %1689 = vmatmul.mubr.bf16.gmra.mrb[20].mxu1 %v2131_v9  ;;  %2440 = vmatprep.subr.bf16.mxu0 %v2592_v15  ;;  %v539_v59 = vsel %vm2810_vm2, %v534_v18, %v538_v52  ;;  %v2099_v9 = vld [vmem:[%s2786_s24 + $0x14] sm:$0x1]  ;;  %v653_v57 = vrot.slane %v651_v3, 4  ;;  %v621_v43 = vsel %vm2810_vm2, %v3045_v38, %v620_v33  ;;  %v676_v38 = vrot.slane %v674_v48, 5  ;;  %v2610_v3 = vld [vmem:[%s3139_s3 + $0x38] sm:$0xff]  }
  0x52   : > { %1696 = vmatprep.mubr.bf16.mxu1 %v2595_v27  ;;  %v2129_v41 = vcombine.low %v525_v56, %v539_v59  ;;  %v586_v17 = vrot.slane %v584_v51, 5  ;;  %v590_v18 = vshll.u32 %v2099_v9, 16  ;;  %2458 = vmatprep.subr.bf16.mxu1 %v2603_v60 }
  0x53   : > { %v657_v26 = vor.u32 %v656_v12, %v653_v57  ;;  %2459 = vmatpush3.bf16.msra.mxu1 %v2603_v60 }
  0x54   : > { %2441 = vmatpush3.bf16.msra.mxu0 %v2592_v15  ;;  %v2100_v15 = vld [vmem:[%s2786_s24 + $0x1c] sm:$0x1]  ;;  %v587_v27 = vor.u32 %v586_v17, %v583_v54  ;;  %v592_v28 = vrot.slane %v590_v18, 5  ;;  %2460 = vmatprep.subr.bf16.mxu1 %v2604_v61 }
  0x55   : > { %2442 = vmatprep.subr.bf16.mxu0 %v2594_v23  ;;  %v604_v20 = vshll.u32 %v2100_v15, 16  ;;  %v658_v42 = vrot.slane %v657_v26, 4 }
  0x56   : > { %v588_v37 = vrot.slane %v587_v27, 4 }
  0x57   : > { %1632 = vmatmul.mubr.bf16.gmra.mrb[24].mxu0 %v2593_v31  ;;  %v606_v29 = vrot.slane %v604_v20, 5  ;;  %v2104_v31 = vld [vmem:[%s2786_s24 + $0x3c] sm:$0x1]  ;;  %2461 = vmatpush3.bf16.msra.mxu1 %v2604_v61 }
  0x58   : > { %2443 = vmatpush3.bf16.msra.mxu0 %v2594_v23  ;;  %1639 = vmatprep.mubr.bf16.mxu0 %v2129_v41  ;;  %v2102_v23 = vld [vmem:[%s2786_s24 + $0x2c] sm:$0x1]  ;;  %v660_v44 = vshll.u32 %v2104_v31, 16  ;;  %v593_v46 = vsel %vm2810_vm2, %v588_v37, %v592_v28  ;;  %v2607_v41 = vld [vmem:[%s3139_s3 + $0x20] sm:$0xff]  }
  0x59   : > { %1697 = vmatmul.mubr.bf16.gmra.mrb[24].mxu1 %v2132_v39  ;;  %2444 = vmatprep.subr.bf16.mxu0 %v2597_v40  ;;  %v632_v34 = vshll.u32 %v2102_v23, 16  ;;  %v607_v39 = vsel %vm2810_vm2, %v3036_v25, %v606_v29  ;;  %v2138_v49 = vcombine.low %v579_v32, %v593_v46 }
  0x5a   : > { %1704 = vmatprep.mubr.bf16.mxu1 %v2600_v58  ;;  %v2139_v50 = vcombine.low %v607_v39, %v621_v43  ;;  %v662_v51 = vrot.slane %v660_v44, 5  ;;  %v677_v58 = vsel %vm2810_vm2, %v672_v53, %v676_v38  ;;  %2462 = vmatprep.subr.bf16.mxu1 %v2605_v63 }
  0x5b   : > { %v634_v6 = vrot.slane %v632_v34, 5  ;;  %2463 = vmatpush3.bf16.msra.mxu1 %v2605_v63 }
  0x5c   : > { %2445 = vmatpush3.bf16.msra.mxu0 %v2597_v40  ;;  %v646_v40 = vshll.u32 %v2103_v24, 16  ;;  %v663_v56 = vsel %vm2810_vm2, %v658_v42, %v662_v51  ;;  %2464 = vmatprep.subr.bf16.mxu1 %v2606_v55 }
  0x5d   : > { %2446 = vmatprep.subr.bf16.mxu0 %v2599_v2  ;;  %v635_v25 = vsel %vm2810_vm2, %v630_v30, %v634_v6  ;;  %v2141_v59 = vcombine.low %v663_v56, %v677_v58 }
  0x5e   : > { %v648_v47 = vrot.slane %v646_v40, 5 }
  0x5f   : > { %1640 = vmatmul.mubr.bf16.gmra.mrb[28].mxu0 %v2598_v1  ;;  %2465 = vmatpush3.bf16.msra.mxu1 %v2606_v55  ;;  %v2608_v1 = vld [vmem:[%s3139_s3 + $0x28] sm:$0xff]  }
  0x60   : > { %2447 = vmatpush3.bf16.msra.mxu0 %v2599_v2  ;;  %v649_v52 = vsel %vm2810_vm2, %v644_v35, %v648_v47  ;;  %2450 = vmatprep.mubr.bf16.mxu0 %v2138_v49  ;;  %v2609_v2 = vld [vmem:[%s3139_s3 + $0x30] sm:$0xff]  }
  0x61   : > { %1705 = vmatmul.mubr.bf16.gmra.mrb[28].mxu1 %v2133_v7  ;;  %2448 = vmatprep.subr.bf16.mxu0 %v2602_v14  ;;  %v2140_v54 = vcombine.low %v635_v25, %v649_v52 }
  0x62   : > { %2466 = vmatprep.subr.bf16.mxu1 %v2607_v41 }
  0x63   : > { %2467 = vmatpush3.bf16.msra.mxu1 %v2607_v41 }
  0x64   : > { %2449 = vmatpush3.bf16.msra.mxu0 %v2602_v14  ;;  %2468 = vmatprep.subr.bf16.mxu1 %v2608_v1 }
  0x67   : > { %2451 = vmatmul.mubr.bf16.vlgmr.msra.gmra.mrb[32].mxu0 %v2139_v50  ;;  %2469 = vmatpush3.bf16.msra.mxu1 %v2608_v1 }
  0x68   : > { %2454 = vmatprep.mubr.bf16.mxu0 %v2140_v54  ;;  %2470 = vmatprep.subr.bf16.mxu1 %v2609_v2 }
  0x6b   : > { %2471 = vmatpush3.bf16.msra.mxu1 %v2609_v2 }
  0x6c   : > { %2472 = vmatprep.subr.bf16.mxu1 %v2610_v3 }
  0x6f   : > { %2455 = vmatmul.mubr.bf16.gmra.mrb[36].mxu0 %v2141_v59  ;;  %2473 = vmatpush3.bf16.msra.mxu1 %v2610_v3 }
  0xfa   : > { %v2266_v4 = vpop.f32.mrb[0].mxu0 }
  0xfb   : > { %v2267_v0 = vpop.f32.mrb[1].mxu0 }
  0xfc   : > { %v2268_v5 = vadd.f32 %v2267_v0, %v2266_v4  ;;  %v2269_v7 = vpop.f32.mrb[2].mxu0  ;;  %v2306_v57 = vpop.f32.mrb[0].mxu1 }
  0xfd   : > { %v2270_v8 = vpop.f32.mrb[3].mxu0  ;;  %v2307_v12 = vpop.f32.mrb[1].mxu1 }
  0xfe   : > { %v2271_v9 = vadd.f32 %v2270_v8, %v2269_v7  ;;  %v1488_v11 = vadd.f32 %v2268_v5, %v2142_v10  ;;  %v2308_v14 = vadd.f32 %v2307_v12, %v2306_v57  ;;  %v2309_v62 = vpop.f32.mrb[2].mxu1 }
  0xff   : > { %v2310_v15 = vpop.f32.mrb[3].mxu1 }
 0x100   : > { %v1491_v13 = vadd.f32 %v2271_v9, %v2142_v10  ;;  %v1553_v16 = vadd.f32 %v2308_v14, %v1488_v11  ;;  %v2311_v17 = vadd.f32 %v2310_v15, %v2309_v62 }
 0x102   : > { %v2272_v18 = vpop.f32.mrb[4].mxu0  ;;  %v1556_v20 = vadd.f32 %v2311_v17, %v1491_v13 }
 0x103   : > { %v2273_v19 = vpop.f32.mrb[5].mxu0 }
 0x104   : > { %v2274_v21 = vadd.f32 %v2273_v19, %v2272_v18  ;;  %v2275_v22 = vpop.f32.mrb[6].mxu0  ;;  %v2312_v27 = vpop.f32.mrb[4].mxu1 }
 0x105   : > { %v2276_v23 = vpop.f32.mrb[7].mxu0  ;;  %v2313_v28 = vpop.f32.mrb[5].mxu1 }
 0x106   : > { %v2277_v24 = vadd.f32 %v2276_v23, %v2275_v22  ;;  %v1496_v26 = vadd.f32 %v2274_v21, %v2142_v10  ;;  %v2314_v30 = vadd.f32 %v2313_v28, %v2312_v27  ;;  %v2315_v31 = vpop.f32.mrb[6].mxu1 }
 0x107   : > { %v2316_v32 = vpop.f32.mrb[7].mxu1 }
 0x108   : > { %v1499_v29 = vadd.f32 %v2277_v24, %v2142_v10  ;;  %v1561_v33 = vadd.f32 %v2314_v30, %v1496_v26  ;;  %v2317_v34 = vadd.f32 %v2316_v32, %v2315_v31 }
 0x10a   : > { %v2278_v35 = vpop.f32.mrb[8].mxu0  ;;  %v1564_v37 = vadd.f32 %v2317_v34, %v1499_v29 }
 0x10b   : > { %v2279_v36 = vpop.f32.mrb[9].mxu0 }
 0x10c   : > { %v2280_v39 = vadd.f32 %v2279_v36, %v2278_v35  ;;  %v2281_v40 = vpop.f32.mrb[10].mxu0  ;;  %v2318_v44 = vpop.f32.mrb[8].mxu1 }
 0x10d   : > { %v2282_v42 = vpop.f32.mrb[11].mxu0  ;;  %v2319_v45 = vpop.f32.mrb[9].mxu1 }
 0x10e   : > { %v2283_v43 = vadd.f32 %v2282_v42, %v2281_v40  ;;  %v1504_v6 = vadd.f32 %v2280_v39, %v2142_v10  ;;  %v2320_v47 = vadd.f32 %v2319_v45, %v2318_v44  ;;  %v2321_v48 = vpop.f32.mrb[10].mxu1 }
 0x10f   : > { %v2322_v49 = vpop.f32.mrb[11].mxu1 }
 0x110   : > { %v1507_v46 = vadd.f32 %v2283_v43, %v2142_v10  ;;  %v1569_v50 = vadd.f32 %v2320_v47, %v1504_v6  ;;  %v2323_v25 = vadd.f32 %v2322_v49, %v2321_v48 }
 0x112   : > { %v2284_v51 = vpop.f32.mrb[12].mxu0  ;;  %v1572_v53 = vadd.f32 %v2323_v25, %v1507_v46 }
 0x113   : > { %v2285_v52 = vpop.f32.mrb[13].mxu0 }
 0x114   : > { %v2286_v38 = vadd.f32 %v2285_v52, %v2284_v51  ;;  %v2287_v54 = vpop.f32.mrb[14].mxu0  ;;  %v2324_v60 = vpop.f32.mrb[12].mxu1 }
 0x115   : > { %v2288_v56 = vpop.f32.mrb[15].mxu0  ;;  %v2325_v61 = vpop.f32.mrb[13].mxu1 }
 0x116   : > { %v2289_v58 = vadd.f32 %v2288_v56, %v2287_v54  ;;  %v1512_v59 = vadd.f32 %v2286_v38, %v2142_v10  ;;  %v2326_v55 = vadd.f32 %v2325_v61, %v2324_v60  ;;  %v2327_v41 = vpop.f32.mrb[14].mxu1 }
 0x117   : > { %v2328_v1 = vpop.f32.mrb[15].mxu1 }
 0x118   : > { %v1515_v63 = vadd.f32 %v2289_v58, %v2142_v10  ;;  %v1577_v2 = vadd.f32 %v2326_v55, %v1512_v59  ;;  %v2329_v3 = vadd.f32 %v2328_v1, %v2327_v41 }
 0x11a   : > { %v1580_v4 = vadd.f32 %v2329_v3, %v1515_v63  ;;  %v2346_v0 = vpop.f32.mrb[16].mxu0 }
 0x11b   : > { %v2347_v7 = vpop.f32.mrb[17].mxu0 }
 0x11c   : > { %v2386_v5 = vpop.f32.mrb[16].mxu1  ;;  %v2348_v9 = vadd.f32 %v2347_v7, %v2346_v0  ;;  %v2349_v11 = vpop.f32.mrb[18].mxu0 }
 0x11d   : > { %v2387_v8 = vpop.f32.mrb[17].mxu1  ;;  %v2350_v13 = vpop.f32.mrb[19].mxu0 }
 0x11e   : > { %v2388_v57 = vadd.f32 %v2387_v8, %v2386_v5  ;;  %v2389_v12 = vpop.f32.mrb[18].mxu1  ;;  %v1618_v62 = vadd.f32 %v2348_v9, %v1553_v16  ;;  %v2351_v15 = vadd.f32 %v2350_v13, %v2349_v11 }
 0x11f   : > { %v2390_v14 = vpop.f32.mrb[19].mxu1 }
 0x120   : > { %v2391_v17 = vadd.f32 %v2390_v14, %v2389_v12  ;;  %v1621_v10 = vadd.f32 %v2351_v15, %v1556_v20  ;;  %v1683_v18 = vadd.f32 %v2388_v57, %v1618_v62 }
 0x122   : > { %v2352_v19 = vpop.f32.mrb[20].mxu0  ;;  %v1686_v22 = vadd.f32 %v2391_v17, %v1621_v10 }
 0x123   : > { %v2353_v23 = vpop.f32.mrb[21].mxu0 }
 0x124   : > { %v2392_v21 = vpop.f32.mrb[20].mxu1  ;;  %v2354_v26 = vadd.f32 %v2353_v23, %v2352_v19  ;;  %v2355_v27 = vpop.f32.mrb[22].mxu0 }
 0x125   : > { %v2393_v24 = vpop.f32.mrb[21].mxu1  ;;  %v2356_v30 = vpop.f32.mrb[23].mxu0 }
 0x126   : > { %v2394_v28 = vadd.f32 %v2393_v24, %v2392_v21  ;;  %v2395_v29 = vpop.f32.mrb[22].mxu1  ;;  %v1626_v32 = vadd.f32 %v2354_v26, %v1561_v33  ;;  %v2357_v34 = vadd.f32 %v2356_v30, %v2355_v27 }
 0x127   : > { %v2396_v31 = vpop.f32.mrb[23].mxu1 }
 0x128   : > { %v2397_v35 = vadd.f32 %v2396_v31, %v2395_v29  ;;  %v1629_v36 = vadd.f32 %v2357_v34, %v1564_v37  ;;  %v1691_v16 = vadd.f32 %v2394_v28, %v1626_v32 }
 0x12a   : > { %v2358_v39 = vpop.f32.mrb[24].mxu0  ;;  %v1694_v20 = vadd.f32 %v2397_v35, %v1629_v36  ;;  %v2215_v35 = vld [vmem:[%s3140_s4] ss:$0 sm:$0xff] }
 0x12b   : > { %v2359_v42 = vpop.f32.mrb[25].mxu0 }
 0x12c   : > { %v2398_v40 = vpop.f32.mrb[24].mxu1  ;;  %v2360_v6 = vadd.f32 %v2359_v42, %v2358_v39  ;;  %v2361_v44 = vpop.f32.mrb[26].mxu0 }
 0x12d   : > { %v2399_v43 = vpop.f32.mrb[25].mxu1  ;;  %v2362_v47 = vpop.f32.mrb[27].mxu0 }
 0x12e   : > { %v2400_v45 = vadd.f32 %v2399_v43, %v2398_v40  ;;  %v2401_v46 = vpop.f32.mrb[26].mxu1  ;;  %v1634_v49 = vadd.f32 %v2360_v6, %v1569_v50  ;;  %v2363_v25 = vadd.f32 %v2362_v47, %v2361_v44 }
 0x12f   : > { %v2402_v48 = vpop.f32.mrb[27].mxu1 }
 0x130   : > { %v2403_v51 = vadd.f32 %v2402_v48, %v2401_v46  ;;  %v1637_v52 = vadd.f32 %v2363_v25, %v1572_v53  ;;  %v1699_v33 = vadd.f32 %v2400_v45, %v1634_v49 }
 0x132   : > { %v2364_v38 = vpop.f32.mrb[28].mxu0  ;;  %v1702_v37 = vadd.f32 %v2403_v51, %v1637_v52 }
 0x133   : > { %v2365_v56 = vpop.f32.mrb[29].mxu0 }
 0x134   : > { %v2404_v54 = vpop.f32.mrb[28].mxu1  ;;  %v2366_v59 = vadd.f32 %v2365_v56, %v2364_v38  ;;  %v2367_v60 = vpop.f32.mrb[30].mxu0 }
 0x135   : > { %v2405_v58 = vpop.f32.mrb[29].mxu1  ;;  %v2368_v55 = vpop.f32.mrb[31].mxu0 }
 0x136   : > { %v2406_v61 = vadd.f32 %v2405_v58, %v2404_v54  ;;  %v2407_v63 = vpop.f32.mrb[30].mxu1  ;;  %v1642_v1 = vadd.f32 %v2366_v59, %v1577_v2  ;;  %v2369_v3 = vadd.f32 %v2368_v55, %v2367_v60 }
 0x137   : > { %v2408_v41 = vpop.f32.mrb[31].mxu1 }
 0x138   : > { %v2409_v0 = vadd.f32 %v2408_v41, %v2407_v63  ;;  %v1645_v5 = vadd.f32 %v2369_v3, %v1580_v4  ;;  %v1707_v50 = vadd.f32 %v2406_v61, %v1642_v1 }
 0x13a   : > { %v2452_v7 = vpop.f32.mrb[32].mxu0  ;;  %v1710_v8 = vadd.f32 %v2409_v0, %v1645_v5 }
 0x13b   : > { %v1756_v53 = vadd.f32 %v2452_v7, %v1691_v16  ;;  %v1747_v9 = vpop.f32.mrb[33].mxu0 }
 0x13c   : > { %v1748_v11 = vadd.f32 %v1747_v9, %v1683_v18  ;;  %v2453_v57 = vpop.f32.mrb[34].mxu0 }
 0x13d   : > { %v1759_v12 = vadd.f32 %v2453_v57, %v1694_v20  ;;  %v1750_v13 = vpop.f32.mrb[35].mxu0  ;;  %v1780_v62 = vmax.f32 %v1756_v53, 0.0 }
 0x13e   : > { %v1751_v14 = vadd.f32 %v1750_v13, %v1686_v22  ;;  %v1778_v17 = vmax.f32 %v1748_v11, 0.0 }
 0x13f   : > { %v1781_v15 = vmax.f32 %v1759_v12, 0.0 }
 0x140   : > { %v1779_v10 = vmax.f32 %v1751_v14, 0.0 }
 0x141   : > { %v1787_v19 = vpack.c.bf16 %v1781_v15, %v1780_v62 }
 0x142   : > { %v1786_v21 = vpack.c.bf16 %v1779_v10, %v1778_v17  ;;  %v2456_v2 = vpop.f32.mrb[36].mxu0 }
 0x143   : > { %v1772_v23 = vadd.f32 %v2456_v2, %v1707_v50  ;;  %v1763_v24 = vpop.f32.mrb[37].mxu0 }
 0x144   : > { %v1764_v4 = vadd.f32 %v1763_v24, %v1699_v33  ;;  %v2457_v26 = vpop.f32.mrb[38].mxu0  ;;  %2474 = vmatprep.mubr.bf16.mxu1 %v1786_v21 }
 0x145   : > { %v1775_v27 = vadd.f32 %v2457_v26, %v1710_v8  ;;  %v1766_v28 = vpop.f32.mrb[39].mxu0  ;;  %2475 = vmatmul.mubr.bf16.vlgmr.msra.gmra.mrb[32].mxu1 %v1787_v19  ;;  %v1784_v29 = vmax.f32 %v1772_v23, 0.0 }
 0x146   : > { %v1767_v18 = vadd.f32 %v1766_v28, %v1702_v37  ;;  %v1782_v22 = vmax.f32 %v1764_v4, 0.0 }
 0x147   : > { %v1785_v30 = vmax.f32 %v1775_v27, 0.0 }
 0x148   : > { %v1783_v31 = vmax.f32 %v1767_v18, 0.0 }
 0x149   : > { %v1789_v32 = vpack.c.bf16 %v1785_v30, %v1784_v29 }
 0x14a   : > { %v1788_v34 = vpack.c.bf16 %v1783_v31, %v1782_v22 }
 0x14c   : > { %2478 = vmatprep.mubr.bf16.mxu1 %v1788_v34 }
 0x14d   : > { %2479 = vmatmul.mubr.bf16.gmra.mrb[36].mxu1 %v1789_v32 }
 0x218   : > { %v2476_v36 = vpop.f32.mrb[32].mxu1 }
 0x219   : > { %v1904_v16 = vadd.f32 %v2476_v36, %v2215_v35  ;;  %v1895_v39 = vpop.f32.mrb[33].mxu1 }
 0x21a   : > { %v1896_v40 = vadd.f32 %v2215_v35, %v1895_v39  ;;  %v2477_v20 = vpop.f32.mrb[34].mxu1 }
 0x21b   : > { %v1907_v42 = vadd.f32 %v2477_v20, %v2215_v35  ;;  %v1898_v43 = vpop.f32.mrb[35].mxu1  ;;  %v1928_v44 = vmax.f32 %v1904_v16, 0.0 }
 0x21c   : > { %v1899_v6 = vadd.f32 %v2215_v35, %v1898_v43  ;;  %v1926_v46 = vmax.f32 %v1896_v40, 0.0 }
 0x21d   : > { %v1929_v45 = vmax.f32 %v1907_v42, 0.0 }
 0x21e   : > { %v1927_v47 = vmax.f32 %v1899_v6, 0.0 }
 0x21f   : > { %v2235_v48 = vpack.c.bf16 %v1929_v45, %v1928_v44 }
 0x220   : > { %v2230_v49 = vpack.c.bf16 %v1927_v47, %v1926_v46  ;;  %v2480_v25 = vpop.f32.mrb[36].mxu1 }
 0x221   : > { %2247 = vst [vmem:[%s260_s28 + $0x8] sm:$0xff] %v2235_v48   ;;  %v1920_v51 = vadd.f32 %v2480_v25, %v2215_v35  ;;  %v1911_v52 = vpop.f32.mrb[37].mxu1 }
 0x222   : > { %2231 = vst [vmem:[%s260_s28] sm:$0xff] %v2230_v49   ;;  %v1912_v33 = vadd.f32 %v2215_v35, %v1911_v52  ;;  %v2481_v38 = vpop.f32.mrb[38].mxu1 }
 0x223   : > { %v1923_v54 = vadd.f32 %v2481_v38, %v2215_v35  ;;  %v1914_v37 = vpop.f32.mrb[39].mxu1  ;;  %v1932_v58 = vmax.f32 %v1920_v51, 0.0 }
 0x224   : > { %v1915_v56 = vadd.f32 %v2215_v35, %v1914_v37  ;;  %v1930_v60 = vmax.f32 %v1912_v33, 0.0 }
 0x225   : > { %v1933_v59 = vmax.f32 %v1923_v54, 0.0 }
 0x226   : > { %v1931_v61 = vmax.f32 %v1915_v56, 0.0 }
 0x227   : > { %v2245_v63 = vpack.c.bf16 %v1933_v59, %v1932_v58 }
 0x228   : > { %v2240_v55 = vpack.c.bf16 %v1931_v61, %v1930_v60 }
 0x229   : > { %2249 = vst [vmem:[%s260_s28 + $0x18] sm:$0xff] %v2245_v63  }
 0x22a   : > { %2248 = vst [vmem:[%s260_s28 + $0x10] sm:$0xff] %v2240_v55  }
 0x22b PF: > { %s15_s20 = sadd.s32 1, %s2633_s20   ;;  %s3144_s18 = smov %s2629_s19 }
 0x22c   : > { %p12_p5 = scmp.ge.s32.totalorder %s15_s20, 4   ;;  %s3145_s19 = smov %s3147_s21 }
 0x22e   :  { %14 = sbr.rel (!%p12_p5) target bundleno = 2 (0x2), region = 75 }

// kernel: repvgg_stage_forward.3
= control target key start
LH: loop header
LB: loop body
LE: loop exit
PB: predicated region body
PF: predicated region fallthrough
CT: control target
= control target key end

     0   :  { %s2789_s18 = smov 0   ;;  %s2791_s19 = smov 0   ;;  %s3418_s0 = inlined_call_operand.vmem [shape: bf16[2,1,10,10,128], index: 0, kind: input, shape index: {}]   ;;  %s3419_s1 = inlined_call_operand.vmem [shape: bf16[1152,128], index: 1, kind: input, shape index: {}]   ;;  %s3420_s2 = inlined_call_operand.vmem [shape: f32[1,128], index: 2, kind: input, shape index: {}]   ;;  %s3421_s3 = inlined_call_operand.vmem [shape: bf16[128,128], index: 3, kind: input, shape index: {}]   ;;  %s3422_s4 = inlined_call_operand.vmem [shape: f32[1,128], index: 4, kind: input, shape index: {}]   ;;  %s3423_s5 = inlined_call_operand.vmem [shape: bf16[2,1,8,8,128], index: 5, kind: output, shape index: {}]  }
   0x1   :  { %s2793_s20 = smov 0  }
   0x2 LB: > { %s27_s21 = sadd.s32 1, %s2753_s19  ;;  %p2166_p0 = scmp.ge.s32.totalorder %s2757_s20, 1  ;;  %s2757_s20 = sphi %s2793_s20, %s15_s20   ;;  %s2753_s19 = sphi %s2791_s19, %s3429_s19   ;;  %s2749_s18 = sphi %s2789_s18, %s3428_s18  }
   0x3   : > { %p29_p1 = scmp.ge.s32.totalorder %s27_s21, 2  ;;  %p207_p2 = scmp.lt.s32.totalorder %s2757_s20, 3 }
   0x5   : > { %s3431_s21 = smov (%p29_p1, %s27_s21), 0  ;;  %p208_p3 = pnand %p2166_p0, %p207_p2 }
   0x6   : > { %v2643_v0 = vld [vmem:[%s3419_s1 + $0x40] sm:$0xff] (!%p208_p3)   ;;  %v2647_v4 = vld [vmem:[%s3419_s1 + $0x48] sm:$0xff] (!%p208_p3)   ;;  %v2651_v8 = vld [vmem:[%s3419_s1 + $0x50] sm:$0xff] (!%p208_p3)   ;;  %p243_p4 = scmp.lt.s32.totalorder (!%p208_p3), %s2749_s18, 1  ;;  %vm278_vm0 = vsmask.f32 (!%p208_p3), 3328 }
   0x7   : > { %211 = sbr.rel (%p208_p3) target bundleno = 557 (0x22d), region = 40  ;;  %v2644_v1 = vld [vmem:[%s3419_s1] sm:$0xff] (!%p208_p3)   ;;  %2386 = vmatprep.subr.bf16.mxu0 (!%p208_p3), %v2643_v0  ;;  %v2648_v5 = vld [vmem:[%s3419_s1 + $0x8] sm:$0xff] (!%p208_p3)   ;;  %v2652_v9 = vld [vmem:[%s3419_s1 + $0x10] sm:$0xff] (!%p208_p3)   ;;  %vm417_vm1 = vcmask (!%p208_p3), 1042432   ;;  %vm418_vm2 = vcmask (!%p208_p3), 1046532  }
   0x8   : > { %v2645_v2 = vld [vmem:[%s3419_s1 + $0xc0] sm:$0xff] (!%p208_p3)   ;;  %2387 = vmatpush3.bf16.msra.mxu0 (!%p208_p3), %v2644_v1  ;;  %v2649_v6 = vld [vmem:[%s3419_s1 + $0xc8] sm:$0xff] (!%p208_p3)   ;;  %v2653_v10 = vld [vmem:[%s3419_s1 + $0xd0] sm:$0xff] (!%p208_p3)   ;;  %vm279_vm3 = vsmask.f32 (!%p208_p3), 7440 }
   0x9   : > { %v2646_v3 = vld [vmem:[%s3419_s1 + $0x80] sm:$0xff] (!%p208_p3)   ;;  %2426 = vmatprep.subr.bf16.mxu1 (!%p208_p3), %v2645_v2  ;;  %2388 = vmatprep.subr.bf16.mxu0 (!%p208_p3), %v2647_v4  ;;  %v2650_v7 = vld [vmem:[%s3419_s1 + $0x88] sm:$0xff] (!%p208_p3)   ;;  %v2654_v11 = vld [vmem:[%s3419_s1 + $0x90] sm:$0xff] (!%p208_p3)  }
   0xa   : > { %2427 = vmatpush3.bf16.msra.mxu1 (!%p208_p3), %v2646_v3  ;;  %v2655_v12 = vld [vmem:[%s3419_s1 + $0x58] sm:$0xff] (!%p208_p3)   ;;  %v2659_v16 = vld [vmem:[%s3419_s1 + $0x60] sm:$0xff] (!%p208_p3)   ;;  %v2663_v20 = vld [vmem:[%s3419_s1 + $0x68] sm:$0xff] (!%p208_p3)  }
   0xb   : > { %2428 = vmatprep.subr.bf16.mxu1 (!%p208_p3), %v2649_v6  ;;  %v2656_v13 = vld [vmem:[%s3419_s1 + $0x18] sm:$0xff] (!%p208_p3)   ;;  %v2660_v17 = vld [vmem:[%s3419_s1 + $0x20] sm:$0xff] (!%p208_p3)   ;;  %v2664_v21 = vld [vmem:[%s3419_s1 + $0x28] sm:$0xff] (!%p208_p3)  }
   0xc   : > { %2389 = vmatpush3.bf16.msra.mxu0 (!%p208_p3), %v2648_v5  ;;  %v2657_v14 = vld [vmem:[%s3419_s1 + $0xd8] sm:$0xff] (!%p208_p3)   ;;  %v2661_v18 = vld [vmem:[%s3419_s1 + $0xe0] sm:$0xff] (!%p208_p3)   ;;  %v2665_v22 = vld [vmem:[%s3419_s1 + $0xe8] sm:$0xff] (!%p208_p3)  }
   0xd   : > { %2390 = vmatprep.subr.bf16.mxu0 (!%p208_p3), %v2651_v8  ;;  %v2658_v15 = vld [vmem:[%s3419_s1 + $0x98] sm:$0xff] (!%p208_p3)   ;;  %v2662_v19 = vld [vmem:[%s3419_s1 + $0xa0] sm:$0xff] (!%p208_p3)   ;;  %v2666_v23 = vld [vmem:[%s3419_s1 + $0xa8] sm:$0xff] (!%p208_p3)  }
   0xe   : > { %2429 = vmatpush3.bf16.msra.mxu1 %v2650_v7  ;;  %s3433_s18 = smov (!%p243_p4, %s2749_s18), 1  ;;  %v2667_v24 = vld [vmem:[%s3419_s1 + $0x70] sm:$0xff]   ;;  %v2671_v28 = vld [vmem:[%s3419_s1 + $0x78] sm:$0xff]   ;;  %v2676_v46 = vld [vmem:[%s3419_s1 + $0x140] sm:$0xff]  }
   0xf   : > { %2430 = vmatprep.subr.bf16.mxu1 %v2653_v10  ;;  %s2618_s30 = smul.u32 80, %s3433_s18  ;;  %v2668_v25 = vld [vmem:[%s3419_s1 + $0x30] sm:$0xff]   ;;  %v2672_v29 = vld [vmem:[%s3419_s1 + $0x38] sm:$0xff]   ;;  %vm2934_vm4 = vmor %vm278_vm0, %vm279_vm3  ;;  %s2362_s26 = sshll.u32 %s3433_s18, 5 }
  0x10   : > { %2391 = vmatpush3.bf16.msra.mxu0 %v2652_v9  ;;  %v2669_v26 = vld [vmem:[%s3419_s1 + $0xf0] sm:$0xff]   ;;  %v2673_v30 = vld [vmem:[%s3419_s1 + $0xf8] sm:$0xff]   ;;  %vm2942_vm5 = vmor %vm417_vm1, %vm418_vm2  ;;  %s260_s28 = scalar_lea.vmem %s3423_s5, %s2362_s26 }
  0x11   : > { %2392 = vmatprep.subr.bf16.mxu0 %v2655_v12  ;;  %v2670_v27 = vld [vmem:[%s3419_s1 + $0xb0] sm:$0xff]   ;;  %s2904_s16 = scalar_lea.vmem %s3418_s0, %s2618_s30  ;;  %v2674_v45 = vld [vmem:[%s3419_s1 + $0xb8] sm:$0xff]   ;;  %v2679_v5 = vld [vmem:[%s3419_s1 + $0x1c0] sm:$0xff]  }
  0x12   : > { %2431 = vmatpush3.bf16.msra.mxu1 %v2654_v11  ;;  %v2913_v31 = vld [vmem:[%s2904_s16] sm:$0xf]  ;;  %v2916_v32 = vld [vmem:[%s2904_s16 + $0x8] sm:$0xf]  ;;  %v270_v33 = vld [vmem:[%s2904_s16 + $0x4] sm:$0x1] }
  0x13   : > { %2432 = vmatprep.subr.bf16.mxu1 %v2657_v14  ;;  %v271_v34 = vld [vmem:[%s2904_s16 + $0xc] sm:$0x1]  ;;  %v282_v35 = vshrl.u32 %v2913_v31, 16  ;;  %v285_v36 = vshll.u32 %v2913_v31, 16  ;;  %v291_v37 = vshll.u32 %v270_v33, 16  ;;  %v296_v38 = vshrl.u32 %v2916_v32, 16 }
  0x14   : > { %2393 = vmatpush3.bf16.msra.mxu0 %v2656_v13  ;;  %v299_v39 = vshll.u32 %v2916_v32, 16  ;;  %v305_v40 = vshll.u32 %v271_v34, 16  ;;  %v422_v44 = vrot.slane %v270_v33, 5  ;;  %v2178_v50 = vld [vmem:[%s2904_s16 + $0x8] sm:$0xf]  ;;  %v426_v55 = vrot.slane %v271_v34, 5 }
  0x15   : > { %2394 = vmatprep.subr.bf16.mxu0 %v2659_v16  ;;  %v284_v41 = vrot.slane %v282_v35, 4  ;;  %v287_v42 = vrot.slane %v285_v36, 5  ;;  %v298_v43 = vrot.slane %v296_v38, 4  ;;  %v293_v47 = vrot.slane %v291_v37, 5  ;;  %v2179_v51 = vld [vmem:[%s2904_s16 + $0x10] sm:$0xf] }
  0x16   : > { %2433 = vmatpush3.bf16.msra.mxu1 %v2658_v15  ;;  %v301_v48 = vrot.slane %v299_v39, 5  ;;  %v307_v54 = vrot.slane %v305_v40, 5  ;;  %v470_v56 = vshrl.u32 %v2178_v50, 16  ;;  %v473_v58 = vshll.u32 %v2178_v50, 16  ;;  %v393_v60 = vld [vmem:[%s2904_s16] sm:$0xe] }
  0x17   : > { %2434 = vmatprep.subr.bf16.mxu1 %v2661_v18  ;;  %v288_v49 = vor.u32 %v287_v42, %v284_v41  ;;  %v2254_v59 = vcombine.low %v2178_v50, %v2179_v51  ;;  %v394_v61 = vld [vmem:[%s2904_s16 + $0x8] sm:$0xe]  ;;  %v484_v63 = vshrl.u32 %v2179_v51, 16  ;;  %v487_v2 = vshll.u32 %v2179_v51, 16  ;;  %v2678_v9 = vld [vmem:[%s3419_s1 + $0x100] sm:$0xff]   ;;  %v2686_v35 = vld [vmem:[%s3419_s1 + $0x150] sm:$0xff]  }
  0x18   : > { %2395 = vmatpush3.bf16.msra.mxu0 %v2660_v17  ;;  %v302_v53 = vor.u32 %v301_v48, %v298_v43  ;;  %v2170_v3 = vrot.slane %v393_v60, 9  ;;  %v2171_v4 = vrot.slane %v394_v61, 9  ;;  %v2242_v7 = vcombine.low %v2913_v31, %v2916_v32  ;;  %v2680_v14 = vld [vmem:[%s3419_s1 + $0x180] sm:$0xff]   ;;  %v2681_v17 = vld [vmem:[%s3419_s1 + $0x148] sm:$0xff]   ;;  %v2180_v41 = vld [vmem:[%s2904_s16 + $0x18] sm:$0xf] }
  0x19   : > { %2396 = vmatprep.subr.bf16.mxu0 %v2663_v20  ;;  %v289_v57 = vrot.slane %v288_v49, 4  ;;  %1670 = vmatprep.mubr.bf16.mxu1 %v2254_v59  ;;  %v472_v8 = vrot.slane %v470_v56, 4  ;;  %v475_v11 = vrot.slane %v473_v58, 5  ;;  %v486_v15 = vrot.slane %v484_v63, 4  ;;  %v2683_v20 = vld [vmem:[%s3419_s1 + $0x1c8] sm:$0xff]   ;;  %v2689_v59 = vld [vmem:[%s3419_s1 + $0x1d0] sm:$0xff]  }
  0x1a   : > { %2435 = vmatpush3.bf16.msra.mxu1 %v2662_v19  ;;  %v303_v62 = vrot.slane %v302_v53, 4  ;;  %v423_v12 = vsel %vm2942_vm5, %v2170_v3, %v422_v44  ;;  %v427_v13 = vsel %vm2942_vm5, %v2171_v4, %v426_v55  ;;  %v489_v18 = vrot.slane %v487_v2, 5  ;;  %v2682_v19 = vld [vmem:[%s3419_s1 + $0x108] sm:$0xff]   ;;  %v2994_v42 = vld [vmem:[%s2904_s16 + $0x20] sm:$0xf]  ;;  %v2690_v4 = vld [vmem:[%s3419_s1 + $0x190] sm:$0xff]  }
  0x1b   : > { %2436 = vmatprep.subr.bf16.mxu1 %v2665_v22  ;;  %v294_v1 = vsel %vm2934_vm4, %v289_v57, %v293_v47  ;;  %v2250_v16 = vcombine.low %v423_v12, %v427_v13  ;;  %v2978_v22 = vld [vmem:[%s2904_s16 + $0x18] sm:$0xf]  ;;  %v2684_v34 = vld [vmem:[%s3419_s1 + $0x188] sm:$0xff]   ;;  %v476_v36 = vor.u32 %v475_v11, %v472_v8  ;;  %v2255_v47 = vcombine.low %v2180_v41, %v2994_v42  ;;  %v395_v48 = vld [vmem:[%s2904_s16 + $0x10] sm:$0xe] }
  0x1c   : > { %2397 = vmatpush3.bf16.msra.mxu0 %v2664_v21  ;;  %v308_v6 = vsel %vm2934_vm4, %v303_v62, %v307_v54  ;;  %v2975_v21 = vld [vmem:[%s2904_s16 + $0x10] sm:$0xf]  ;;  %v490_v37 = vor.u32 %v489_v18, %v486_v15  ;;  %v396_v49 = vld [vmem:[%s2904_s16 + $0x18] sm:$0xe]  ;;  %v498_v54 = vshrl.u32 %v2180_v41, 16  ;;  %v501_v56 = vshll.u32 %v2180_v41, 16 }
  0x1d   : > { %2398 = vmatprep.subr.bf16.mxu0 %v2667_v24  ;;  %v2246_v10 = vcombine.low %v294_v1, %v308_v6  ;;  %v273_v24 = vld [vmem:[%s2904_s16 + $0x1c] sm:$0x1]  ;;  %v3002_v50 = vrot.slane %v476_v36, 4  ;;  %v2172_v57 = vrot.slane %v395_v48, 9  ;;  %v2243_v61 = vcombine.low %v2975_v21, %v2978_v22  ;;  %v3036_v13 = vld [vmem:[%s2904_s16 + $0x20] sm:$0xf] }
  0x1e   : > { %2437 = vmatpush3.bf16.msra.mxu1 %v2666_v23  ;;  %v272_v23 = vld [vmem:[%s2904_s16 + $0x14] sm:$0x1]  ;;  %v3004_v51 = vrot.slane %v490_v37, 4  ;;  %v2173_v62 = vrot.slane %v396_v49, 9  ;;  %v434_v63 = vrot.slane %v273_v24, 5  ;;  %v512_v2 = vshrl.u32 %v2994_v42, 16 }
  0x1f   : > { %2438 = vmatprep.subr.bf16.mxu1 %v2669_v26  ;;  %1605 = vmatprep.mubr.bf16.mxu0 %v2246_v10  ;;  %v313_v26 = vshll.u32 %v2975_v21, 16  ;;  %v430_v58 = vrot.slane %v272_v23, 5  ;;  %v3027_v8 = vrot.slane %v498_v54, 4  ;;  %v2692_v10 = vld [vmem:[%s3419_s1 + $0x118] sm:$0xff]   ;;  %v503_v11 = vrot.slane %v501_v56, 5  ;;  %v2729_v0 = vld [vmem:[%s3421_s3 + $0x10] sm:$0xff]  }
  0x20   : > { %2399 = vmatpush3.bf16.msra.mxu0 %v2668_v25  ;;  %v310_v25 = vshrl.u32 %v2975_v21, 16  ;;  %v435_v6 = vsel %vm2942_vm5, %v2173_v62, %v434_v63  ;;  %v2693_v12 = vld [vmem:[%s3419_s1 + $0x1d8] sm:$0xff]   ;;  %v274_v15 = vld [vmem:[%s2904_s16 + $0x24] sm:$0x1]  ;;  %v341_v18 = vshll.u32 %v3036_v13, 16 }
  0x21   : > { %2400 = vmatprep.subr.bf16.mxu0 %v2671_v28  ;;  %v324_v28 = vshrl.u32 %v2978_v22, 16  ;;  %v315_v32 = vrot.slane %v313_v26, 5  ;;  %v431_v3 = vsel %vm2942_vm5, %v2172_v57, %v430_v58  ;;  %v2696_v26 = vld [vmem:[%s3419_s1 + $0x160] sm:$0xff]   ;;  %v438_v54 = vrot.slane %v274_v15, 5 }
  0x22   : > { %2439 = vmatpush3.bf16.msra.mxu1 %v2670_v27  ;;  %v319_v27 = vshll.u32 %v272_v23, 16  ;;  %v312_v31 = vrot.slane %v310_v25, 4  ;;  %v2694_v25 = vld [vmem:[%s3419_s1 + $0x198] sm:$0xff]   ;;  %v2700_v63 = vld [vmem:[%s3419_s1 + $0x1a0] sm:$0xff]  }
  0x23   : > { %2440 = vmatprep.subr.bf16.mxu1 %v2673_v30  ;;  %v333_v30 = vshll.u32 %v273_v24, 16  ;;  %v326_v33 = vrot.slane %v324_v28, 4  ;;  %v343_v24 = vrot.slane %v341_v18, 5 }
  0x24   : > { %2401 = vmatpush3.bf16.msra.mxu0 %v2672_v29  ;;  %v327_v29 = vshll.u32 %v2978_v22, 16  ;;  %v321_v38 = vrot.slane %v319_v27, 5  ;;  %v316_v40 = vor.u32 %v315_v32, %v312_v31  ;;  %v3053_v27 = vrot.slane %v512_v2, 4  ;;  %v2182_v32 = vld [vmem:[%s2904_s16 + $0x28] sm:$0xf] }
  0x25   : > { %2466 = vmatprep.subr.bf16.mxu0 %v2676_v46  ;;  %v335_v44 = vrot.slane %v333_v30, 5  ;;  %v526_v37 = vshrl.u32 %v2182_v32, 16  ;;  %v2701_v2 = vld [vmem:[%s3419_s1 + $0x168] sm:$0xff]  }
  0x26   : > { %2441 = vmatpush3.bf16.msra.mxu1 %v2674_v45  ;;  %v329_v39 = vrot.slane %v327_v29, 5  ;;  %v2688_v45 = vld [vmem:[%s3419_s1 + $0x110] sm:$0xff]   ;;  %v317_v46 = vrot.slane %v316_v40, 4  ;;  %v529_v40 = vshll.u32 %v2182_v32, 16 }
  0x27   : > { %2506 = vmatprep.subr.bf16.mxu1 %v2679_v5  ;;  %1606 = vmatmul.mubr.bf16.vlgmr.msra.gmra.mrb[0].mxu0 %v2242_v7  ;;  %v515_v5 = vshll.u32 %v2994_v42, 16  ;;  %v2691_v7 = vld [vmem:[%s3419_s1 + $0x158] sm:$0xff]   ;;  %v397_v42 = vld [vmem:[%s2904_s16 + $0x20] sm:$0xe]  ;;  %v528_v49 = vrot.slane %v526_v37, 4 }
  0x28   : > { %2467 = vmatpush3.bf16.msra.mxu0 %v2678_v9  ;;  %v330_v43 = vor.u32 %v329_v39, %v326_v33  ;;  %v322_v55 = vsel %vm2934_vm4, %v317_v46, %v321_v38  ;;  %v2251_v9 = vcombine.low %v431_v3, %v435_v6  ;;  %v2183_v33 = vld [vmem:[%s2904_s16 + $0x30] sm:$0xf]  ;;  %v2698_v38 = vld [vmem:[%s3419_s1 + $0x120] sm:$0xff]   ;;  %v398_v46 = vld [vmem:[%s2904_s16 + $0x28] sm:$0xe] }
  0x29   : > { %1671 = vmatmul.mubr.bf16.vlgmr.msra.gmra.mrb[0].mxu1 %v2250_v16  ;;  %2468 = vmatprep.subr.bf16.mxu0 %v2681_v17  ;;  %v275_v16 = vld [vmem:[%s2904_s16 + $0x2c] sm:$0x1]  ;;  %v338_v17 = vshrl.u32 %v3036_v13, 16  ;;  %v2256_v41 = vcombine.low %v2182_v32, %v2183_v33  ;;  %v2175_v58 = vrot.slane %v398_v46, 9  ;;  %v2185_v32 = vld [vmem:[%s2904_s16 + $0x40] sm:$0xf] }
  0x2a   : > { %2507 = vmatpush3.bf16.msra.mxu1 %v2680_v14  ;;  %v331_v53 = vrot.slane %v330_v43, 4  ;;  %1678 = vmatprep.mubr.bf16.mxu1 %v2255_v47  ;;  %v3039_v14 = vld [vmem:[%s2904_s16 + $0x28] sm:$0xf]  ;;  %v361_v22 = vshll.u32 %v275_v16, 16  ;;  %v504_v47 = vor.u32 %v503_v11, %v3027_v8  ;;  %v276_v11 = vld [vmem:[%s2904_s16 + $0x34] sm:$0x1] }
  0x2b   : > { %2508 = vmatprep.subr.bf16.mxu1 %v2683_v20  ;;  %v352_v20 = vshrl.u32 %v3039_v14, 16  ;;  %v355_v21 = vshll.u32 %v3039_v14, 16  ;;  %v340_v23 = vrot.slane %v338_v17, 4  ;;  %v2244_v57 = vcombine.low %v3036_v13, %v3039_v14  ;;  %v2702_v6 = vld [vmem:[%s3419_s1 + $0x128] sm:$0xff]  }
  0x2c   : > { %2469 = vmatpush3.bf16.msra.mxu0 %v2682_v19  ;;  %v336_v60 = vsel %vm2934_vm4, %v331_v53, %v335_v44  ;;  %v347_v19 = vshll.u32 %v274_v15, 16  ;;  %v363_v36 = vrot.slane %v361_v22, 5  ;;  %v540_v44 = vshrl.u32 %v2183_v33, 16  ;;  %v2703_v8 = vld [vmem:[%s3419_s1 + $0x1e8] sm:$0xff]   ;;  %v2706_v22 = vld [vmem:[%s3419_s1 + $0x170] sm:$0xff]  }
  0x2d   : > { %2470 = vmatprep.subr.bf16.mxu0 %v2686_v35  ;;  %v2247_v1 = vcombine.low %v322_v55, %v336_v60  ;;  %v354_v29 = vrot.slane %v352_v20, 4  ;;  %v357_v30 = vrot.slane %v355_v21, 5  ;;  %v344_v31 = vor.u32 %v343_v24, %v340_v23  ;;  %v2699_v55 = vld [vmem:[%s3419_s1 + $0x1e0] sm:$0xff]   ;;  %v2704_v21 = vld [vmem:[%s3419_s1 + $0x1a8] sm:$0xff]  }
  0x2e   : > { %2509 = vmatpush3.bf16.msra.mxu1 %v2684_v34  ;;  %v349_v28 = vrot.slane %v347_v19, 5  ;;  %v3057_v34 = vrot.slane %v515_v5, 5  ;;  %v2174_v53 = vrot.slane %v397_v42, 9  ;;  %v3084_v3 = vrot.slane %v504_v47, 4  ;;  %v399_v42 = vld [vmem:[%s2904_s16 + $0x30] sm:$0xe] }
  0x2f   : > { %2510 = vmatprep.subr.bf16.mxu1 %v2689_v59  ;;  %1613 = vmatprep.mubr.bf16.mxu0 %v2247_v1  ;;  %v358_v35 = vor.u32 %v357_v30, %v354_v29  ;;  %v345_v39 = vrot.slane %v344_v31, 4  ;;  %v442_v59 = vrot.slane %v275_v16, 5  ;;  %v375_v17 = vshll.u32 %v276_v11, 16 }
  0x30   : > { %2471 = vmatpush3.bf16.msra.mxu0 %v2688_v45  ;;  %v543_v45 = vshll.u32 %v2183_v33, 16  ;;  %v439_v62 = vsel %vm2942_vm5, %v2174_v53, %v438_v54  ;;  %v518_v13 = vor.u32 %v3057_v34, %v3053_v27  ;;  %v568_v46 = vshrl.u32 %v2185_v32, 16 }
  0x31   : > { %1614 = vmatmul.mubr.bf16.gmra.mrb[4].mxu0 %v2243_v61  ;;  %2472 = vmatprep.subr.bf16.mxu0 %v2691_v7  ;;  %v359_v43 = vrot.slane %v358_v35, 4  ;;  %v350_v48 = vsel %vm2934_vm4, %v345_v39, %v349_v28  ;;  %v531_v61 = vrot.slane %v529_v40, 5  ;;  %v443_v1 = vsel %vm2942_vm5, %v2175_v58, %v442_v59  ;;  %v2184_v28 = vld [vmem:[%s2904_s16 + $0x38] sm:$0xf]  ;;  %v2709_v39 = vld [vmem:[%s3419_s1 + $0x1f0] sm:$0xff]  }
  0x32   : > { %2511 = vmatpush3.bf16.msra.mxu1 %v2690_v4  ;;  %v542_v4 = vrot.slane %v540_v44, 4  ;;  %v2252_v5 = vcombine.low %v439_v62, %v443_v1  ;;  %v545_v7 = vrot.slane %v543_v45, 5  ;;  %v3113_v29 = vrot.slane %v518_v13, 4  ;;  %v2711_v1 = vld [vmem:[%s3419_s1 + $0x178] sm:$0xff]   ;;  %v2195_v13 = vld [vmem:[%s2904_s16 + $0x10] sm:$0xe] }
  0x33   : > { %1679 = vmatmul.mubr.bf16.gmra.mrb[4].mxu1 %v2251_v9  ;;  %2512 = vmatprep.subr.bf16.mxu1 %v2693_v12  ;;  %v364_v56 = vsel %vm2934_vm4, %v359_v43, %v363_v36  ;;  %v3093_v9 = vld [vmem:[%s2904_s16 + $0x30] sm:$0xf]  ;;  %v277_v12 = vld [vmem:[%s2904_s16 + $0x3c] sm:$0x1]  ;;  %v532_v14 = vor.u32 %v531_v61, %v528_v49  ;;  %v377_v31 = vrot.slane %v375_v17, 5  ;;  %v554_v36 = vshrl.u32 %v2184_v28, 16 }
  0x34   : > { %2473 = vmatpush3.bf16.msra.mxu0 %v2692_v10  ;;  %1686 = vmatprep.mubr.bf16.mxu1 %v2256_v41  ;;  %v2248_v60 = vcombine.low %v350_v48, %v364_v56  ;;  %v3096_v10 = vld [vmem:[%s2904_s16 + $0x38] sm:$0xf]  ;;  %v366_v15 = vshrl.u32 %v3093_v9, 16  ;;  %v369_v16 = vshll.u32 %v3093_v9, 16  ;;  %v389_v20 = vshll.u32 %v277_v12, 16 }
  0x35   : > { %2474 = vmatprep.subr.bf16.mxu0 %v2696_v26  ;;  %v380_v18 = vshrl.u32 %v3096_v10, 16  ;;  %v383_v19 = vshll.u32 %v3096_v10, 16  ;;  %v546_v26 = vor.u32 %v545_v7, %v542_v4  ;;  %v3116_v33 = vrot.slane %v532_v14, 4  ;;  %v400_v48 = vld [vmem:[%s2904_s16 + $0x38] sm:$0xe] }
  0x36   : > { %2513 = vmatpush3.bf16.msra.mxu1 %v2694_v25  ;;  %1621 = vmatprep.mubr.bf16.mxu0 %v2248_v60  ;;  %v368_v23 = vrot.slane %v366_v15, 4  ;;  %v371_v24 = vrot.slane %v369_v16, 5  ;;  %v391_v35 = vrot.slane %v389_v20, 5  ;;  %v2257_v37 = vcombine.low %v2184_v28, %v2185_v32  ;;  %v2710_v60 = vld [vmem:[%s3419_s1 + $0x1b0] sm:$0xff]   ;;  %v2713_v7 = vld [vmem:[%s3419_s1 + $0x1f8] sm:$0xff]  }
  0x37   : > { %2514 = vmatprep.subr.bf16.mxu1 %v2699_v55  ;;  %v382_v25 = vrot.slane %v380_v18, 4  ;;  %v385_v27 = vrot.slane %v383_v19, 5  ;;  %v557_v41 = vshll.u32 %v2184_v28, 16  ;;  %v446_v43 = vrot.slane %v276_v11, 5 }
  0x38   : > { %2475 = vmatpush3.bf16.msra.mxu0 %v2698_v38  ;;  %v372_v30 = vor.u32 %v371_v24, %v368_v23  ;;  %v2708_v38 = vld [vmem:[%s3419_s1 + $0x130] sm:$0xff]   ;;  %v3125_v44 = vrot.slane %v546_v26, 4  ;;  %v571_v47 = vshll.u32 %v2185_v32, 16  ;;  %v2176_v49 = vrot.slane %v399_v42, 9  ;;  %v3184_v32 = vld [vmem:[%s2904_s16 + $0x1c] sm:$0x1] }
  0x39   : > { %1622 = vmatmul.mubr.bf16.gmra.mrb[8].mxu0 %v2244_v57  ;;  %2476 = vmatprep.subr.bf16.mxu0 %v2701_v2  ;;  %v386_v34 = vor.u32 %v385_v27, %v382_v25  ;;  %v2177_v54 = vrot.slane %v400_v48, 9  ;;  %v450_v55 = vrot.slane %v277_v12, 5  ;;  %v2245_v57 = vcombine.low %v3093_v9, %v3096_v10  ;;  %v2187_v9 = vld [vmem:[%s2904_s16 + $0x14] sm:$0x1]  ;;  %v2194_v10 = vld [vmem:[%s2904_s16 + $0x8] sm:$0xe] }
  0x3a   : > { %2515 = vmatpush3.bf16.msra.mxu1 %v2700_v63  ;;  %v373_v40 = vrot.slane %v372_v30, 4  ;;  %v556_v58 = vrot.slane %v554_v36, 4  ;;  %v447_v59 = vsel %vm2942_vm5, %v2176_v49, %v446_v43  ;;  %v559_v62 = vrot.slane %v557_v41, 5  ;;  %v3169_v24 = vld [vmem:[%s2904_s16 + $0x10] sm:$0xf] }
  0x3b   : > { %1687 = vmatmul.mubr.bf16.gmra.mrb[8].mxu1 %v2252_v5  ;;  %2516 = vmatprep.subr.bf16.mxu1 %v2703_v8  ;;  %v387_v45 = vrot.slane %v386_v34, 4  ;;  %v451_v63 = vsel %vm2942_vm5, %v2177_v54, %v450_v55  ;;  %v3144_v2 = vrot.slane %v568_v46, 4  ;;  %v2712_v5 = vld [vmem:[%s3419_s1 + $0x138] sm:$0xff]   ;;  %v2186_v8 = vld [vmem:[%s2904_s16 + $0xc] sm:$0x1]  ;;  %v493_v12 = vshll.u32 %v2187_v9, 16 }
  0x3c   : > { %2477 = vmatpush3.bf16.msra.mxu0 %v2702_v6  ;;  %1694 = vmatprep.mubr.bf16.mxu1 %v2257_v37  ;;  %v378_v53 = vsel %vm2934_vm4, %v373_v40, %v377_v31  ;;  %v2253_v4 = vcombine.low %v447_v59, %v451_v63  ;;  %v3149_v6 = vrot.slane %v571_v47, 5  ;;  %v479_v11 = vshll.u32 %v2186_v8, 16  ;;  %v3172_v25 = vld [vmem:[%s2904_s16 + $0x18] sm:$0xf]  ;;  %v3181_v31 = vld [vmem:[%s2904_s16 + $0x14] sm:$0x1] }
  0x3d   : > { %2478 = vmatprep.subr.bf16.mxu0 %v2706_v22  ;;  %v392_v56 = vsel %vm2934_vm4, %v387_v45, %v391_v35  ;;  %v2202_v14 = vrot.slane %v2194_v10, 9  ;;  %v607_v15 = vrot.slane %v2186_v8, 5  ;;  %v2203_v16 = vrot.slane %v2195_v13, 9  ;;  %v2715_v22 = vld [vmem:[%s3419_s1 + $0x200] sm:$0xff]   ;;  %v2188_v46 = vld [vmem:[%s2904_s16 + $0x1c] sm:$0x1] }
  0x3e   : > { %2517 = vmatpush3.bf16.msra.mxu1 %v2704_v21  ;;  %v2249_v61 = vcombine.low %v378_v53, %v392_v56  ;;  %v611_v17 = vrot.slane %v2187_v9, 5  ;;  %v481_v18 = vrot.slane %v479_v11, 5  ;;  %v495_v19 = vrot.slane %v493_v12, 5  ;;  %v2714_v21 = vld [vmem:[%s3419_s1 + $0x1b8] sm:$0xff]   ;;  %v2189_v53 = vld [vmem:[%s2904_s16 + $0x24] sm:$0x1] }
  0x3f   : > { %2518 = vmatprep.subr.bf16.mxu1 %v2709_v39  ;;  %v608_v20 = vsel %vm2942_vm5, %v2202_v14, %v607_v15  ;;  %v560_v26 = vor.u32 %v559_v62, %v556_v58  ;;  %v655_v34 = vshrl.u32 %v3169_v24, 16  ;;  %v658_v36 = vshll.u32 %v3169_v24, 16  ;;  %v2196_v54 = vld [vmem:[%s2904_s16 + $0x18] sm:$0xe]  ;;  %v2197_v56 = vld [vmem:[%s2904_s16 + $0x20] sm:$0xe] }
  0x40   : > { %2479 = vmatpush3.bf16.msra.mxu0 %v2708_v38  ;;  %1629 = vmatprep.mubr.bf16.mxu0 %v2249_v61  ;;  %v612_v23 = vsel %vm2942_vm5, %v2203_v16, %v611_v17  ;;  %v482_v28 = vsel %vm2934_vm4, %v3002_v50, %v481_v18  ;;  %v496_v30 = vsel %vm2934_vm4, %v3004_v51, %v495_v19  ;;  %v664_v37 = vshll.u32 %v3181_v31, 16  ;;  %v2717_v50 = vld [vmem:[%s3419_s1 + $0x208] sm:$0xff]   ;;  %v3223_v15 = vld [vmem:[%s2904_s16 + $0x24] sm:$0x1] }
  0x41   : > { %2480 = vmatprep.subr.bf16.mxu0 %v2711_v1  ;;  %1630 = vmatmul.mubr.bf16.gmra.mrb[12].mxu0 %v2245_v57  ;;  %v2262_v27 = vcombine.low %v608_v20, %v612_v23  ;;  %v2258_v35 = vcombine.low %v482_v28, %v496_v30  ;;  %v669_v38 = vshrl.u32 %v3172_v25, 16  ;;  %v657_v51 = vrot.slane %v655_v34, 4  ;;  %v3218_v12 = vld [vmem:[%s2904_s16 + $0x28] sm:$0xf]  ;;  %v3226_v16 = vld [vmem:[%s2904_s16 + $0x2c] sm:$0x1] }
  0x42   : > { %2519 = vmatpush3.bf16.msra.mxu1 %v2710_v60  ;;  %v672_v39 = vshll.u32 %v3172_v25, 16  ;;  %v678_v40 = vshll.u32 %v3184_v32, 16  ;;  %v574_v41 = vor.u32 %v3149_v6, %v3144_v2  ;;  %v660_v42 = vrot.slane %v658_v36, 5  ;;  %v2718_v60 = vld [vmem:[%s3419_s1 + $0x210] sm:$0xff]   ;;  %v3211_v6 = vld [vmem:[%s2904_s16 + $0x20] sm:$0xf] }
  0x43   : > { %1695 = vmatmul.mubr.bf16.gmra.mrb[12].mxu1 %v2253_v4  ;;  %2520 = vmatprep.subr.bf16.mxu1 %v2713_v7  ;;  %v666_v43 = vrot.slane %v664_v37, 5  ;;  %v671_v45 = vrot.slane %v669_v38, 4  ;;  %v3198_v47 = vrot.slane %v560_v26, 4  ;;  %v2204_v57 = vrot.slane %v2196_v54, 9  ;;  %v2720_v23 = vld [vmem:[%s3419_s1 + $0x218] sm:$0xff]   ;;  %v2721_v36 = vld [vmem:[%s3419_s1 + $0x220] sm:$0xff]  }
  0x44   : > { %2481 = vmatpush3.bf16.msra.mxu0 %v2712_v5  ;;  %1735 = vmatprep.mubr.bf16.mxu0 %v2262_v27  ;;  %v674_v48 = vrot.slane %v672_v39, 5  ;;  %v680_v49 = vrot.slane %v678_v40, 5  ;;  %v661_v55 = vor.u32 %v660_v42, %v657_v51  ;;  %v615_v58 = vrot.slane %v2188_v46, 5  ;;  %v2190_v28 = vld [vmem:[%s2904_s16 + $0x2c] sm:$0x1] }
  0x45   : > { %2570 = vmatprep.subr.bf16.mxu0 %v2715_v22  ;;  %v619_v59 = vrot.slane %v2189_v53, 5  ;;  %v2205_v62 = vrot.slane %v2197_v56, 9  ;;  %v507_v63 = vshll.u32 %v2188_v46, 16  ;;  %v521_v1 = vshll.u32 %v2189_v53, 16  ;;  %v2191_v30 = vld [vmem:[%s2904_s16 + $0x34] sm:$0x1] }
  0x46   : > { %2521 = vmatpush3.bf16.msra.mxu1 %v2714_v21  ;;  %v675_v61 = vor.u32 %v674_v48, %v671_v45  ;;  %v662_v2 = vrot.slane %v661_v55, 4  ;;  %v2266_v4 = vcombine.low %v3169_v24, %v3172_v25  ;;  %v616_v5 = vsel %vm2942_vm5, %v2204_v57, %v615_v58  ;;  %v2199_v51 = vld [vmem:[%s2904_s16 + $0x30] sm:$0xe]  ;;  %v3259_v57 = vld [vmem:[%s2904_s16 + $0x38] sm:$0xf] }
  0x47   : > { %v3213_v7 = vrot.slane %v574_v41, 4  ;;  %v620_v9 = vsel %vm2942_vm5, %v2205_v62, %v619_v59  ;;  %v509_v10 = vrot.slane %v507_v63, 5  ;;  %v523_v11 = vrot.slane %v521_v1, 5  ;;  %v3262_v58 = vld [vmem:[%s2904_s16 + $0x34] sm:$0x1]  ;;  %v2723_v1 = vld [vmem:[%s3419_s1 + $0x228] sm:$0xff]  }
  0x48   : > { %v676_v8 = vrot.slane %v675_v61, 4  ;;  %v667_v13 = vsel %vm2934_vm4, %v662_v2, %v666_v43  ;;  %v2263_v14 = vcombine.low %v616_v5, %v620_v9  ;;  %v683_v17 = vshrl.u32 %v3211_v6, 16  ;;  %v3271_v62 = vld [vmem:[%s2904_s16 + $0x3c] sm:$0x1] }
  0x49   : > { %1736 = vmatmul.mubr.bf16.vlgmr.msra.gmra.mrb[16].mxu0 %v2258_v35  ;;  %v686_v18 = vshll.u32 %v3211_v6, 16  ;;  %v510_v20 = vsel %vm2934_vm4, %v3084_v3, %v509_v10  ;;  %v524_v21 = vsel %vm2934_vm4, %v3113_v29, %v523_v11  ;;  %v697_v3 = vshrl.u32 %v3218_v12, 16  ;;  %v2198_v35 = vld [vmem:[%s2904_s16 + $0x28] sm:$0xe] }
  0x4a   : > { %2571 = vmatpush3.bf16.msra.mxu0 %v2715_v22  ;;  %v681_v19 = vsel %vm2934_vm4, %v676_v8, %v680_v49  ;;  %v692_v22 = vshll.u32 %v3223_v15, 16  ;;  %1743 = vmatprep.mubr.bf16.mxu0 %v2263_v14  ;;  %v2259_v25 = vcombine.low %v510_v20, %v524_v21  ;;  %v685_v26 = vrot.slane %v683_v17, 4  ;;  %v3254_v49 = vld [vmem:[%s2904_s16 + $0x30] sm:$0xf]  ;;  %v2200_v20 = vld [vmem:[%s2904_s16 + $0x38] sm:$0xe] }
  0x4b   : > { %2572 = vmatprep.subr.bf16.mxu0 %v2717_v50  ;;  %v2270_v24 = vcombine.low %v667_v13, %v681_v19  ;;  %v688_v27 = vrot.slane %v686_v18, 5  ;;  %v700_v34 = vshll.u32 %v3218_v12, 16  ;;  %v706_v29 = vshll.u32 %v3226_v16, 16  ;;  %v2193_v19 = vld [vmem:[%s2904_s16 + $0x44] sm:$0x1]  ;;  %v2724_v21 = vld [vmem:[%s3419_s1 + $0x230] sm:$0xff]  }
  0x4c   : > { %v694_v38 = vrot.slane %v692_v22, 5  ;;  %v699_v39 = vrot.slane %v697_v3, 4  ;;  %v2206_v42 = vrot.slane %v2198_v35, 9  ;;  %v623_v45 = vrot.slane %v2190_v28, 5  ;;  %v3299_v35 = vld [vmem:[%s2904_s16 + $0x40] sm:$0xf] }
  0x4d   : > { %1800 = vmatprep.mubr.bf16.mxu1 %v2270_v24  ;;  %v689_v37 = vor.u32 %v688_v27, %v685_v26  ;;  %v702_v40 = vrot.slane %v700_v34, 5  ;;  %v708_v41 = vrot.slane %v706_v29, 5  ;;  %v2207_v46 = vrot.slane %v2199_v51, 9 }
  0x4e   : > { %2573 = vmatpush3.bf16.msra.mxu0 %v2717_v50  ;;  %v800_v50 = vrot.slane %v3223_v15, 5  ;;  %1801 = vmatmul.mubr.bf16.vlgmr.msra.gmra.mrb[16].mxu1 %v2266_v4  ;;  %v627_v48 = vrot.slane %v2191_v30, 5  ;;  %v2267_v54 = vcombine.low %v3211_v6, %v3218_v12  ;;  %v535_v55 = vshll.u32 %v2190_v28, 16  ;;  %v2192_v12 = vld [vmem:[%s2904_s16 + $0x3c] sm:$0x1] }
  0x4f   : > { %2574 = vmatprep.subr.bf16.mxu0 %v2718_v60  ;;  %v690_v43 = vrot.slane %v689_v37, 4  ;;  %v703_v53 = vor.u32 %v702_v40, %v699_v39  ;;  %v549_v56 = vshll.u32 %v2191_v30, 16  ;;  %v711_v63 = vshrl.u32 %v3254_v49, 16  ;;  %v2726_v39 = vld [vmem:[%s3419_s1 + $0x238] sm:$0xff]  }
  0x50   : > { %v628_v61 = vsel %vm2942_vm5, %v2207_v46, %v627_v48  ;;  %v537_v5 = vrot.slane %v535_v55, 5  ;;  %v714_v9 = vshll.u32 %v3254_v49, 16  ;;  %v720_v10 = vshll.u32 %v3262_v58, 16  ;;  %v3312_v46 = vld [vmem:[%s2904_s16 + $0x44] sm:$0x1] }
  0x51   : > { %1744 = vmatmul.mubr.bf16.gmra.mrb[20].mxu0 %v2259_v25  ;;  %v695_v59 = vsel %vm2934_vm4, %v690_v43, %v694_v38  ;;  %v704_v2 = vrot.slane %v703_v53, 4  ;;  %v551_v6 = vrot.slane %v549_v56, 5  ;;  %v713_v8 = vrot.slane %v711_v63, 4 }
  0x52   : > { %2575 = vmatpush3.bf16.msra.mxu0 %v2718_v60  ;;  %v624_v60 = vsel %vm2942_vm5, %v2206_v42, %v623_v45  ;;  %v725_v11 = vshrl.u32 %v3259_v57, 16  ;;  %v538_v14 = vsel %vm2934_vm4, %v3116_v33, %v537_v5  ;;  %v728_v18 = vshll.u32 %v3259_v57, 16  ;;  %v2201_v33 = vld [vmem:[%s2904_s16 + $0x40] sm:$0xe]  ;;  %v3309_v45 = vld [vmem:[%s2904_s16 + $0x48] sm:$0xf] }
  0x53   : > { %2576 = vmatprep.subr.bf16.mxu0 %v2720_v23  ;;  %v2264_v4 = vcombine.low %v624_v60, %v628_v61  ;;  %v709_v13 = vsel %vm2934_vm4, %v704_v2, %v708_v41  ;;  %v552_v17 = vsel %vm2934_vm4, %v3125_v44, %v551_v6  ;;  %v804_v22 = vrot.slane %v3226_v16, 5  ;;  %v2227_v5 = vld [vmem:[%s2904_s16 + $0x18] sm:$0xe] }
  0x54   : > { %v2260_v24 = vcombine.low %v538_v14, %v552_v17  ;;  %v716_v25 = vrot.slane %v714_v9, 5  ;;  %v722_v26 = vrot.slane %v720_v10, 5  ;;  %v727_v27 = vrot.slane %v725_v11, 4  ;;  %v2228_v11 = vld [vmem:[%s2904_s16 + $0x20] sm:$0xe] }
  0x55   : > { %1751 = vmatprep.mubr.bf16.mxu0 %v2264_v4  ;;  %v730_v44 = vrot.slane %v728_v18, 5  ;;  %v734_v28 = vshll.u32 %v3271_v62, 16  ;;  %v2208_v3 = vrot.slane %v2200_v20, 9  ;;  %v631_v34 = vrot.slane %v2192_v12, 5  ;;  %v2226_v4 = vld [vmem:[%s2904_s16 + $0x10] sm:$0xe] }
  0x56   : > { %2577 = vmatpush3.bf16.msra.mxu0 %v2720_v23  ;;  %v2271_v23 = vcombine.low %v695_v59, %v709_v13  ;;  %v717_v30 = vor.u32 %v716_v25, %v713_v8  ;;  %v2209_v29 = vrot.slane %v2201_v33, 9  ;;  %v635_v38 = vrot.slane %v2193_v19, 5  ;;  %v3320_v59 = vld [vmem:[%s2904_s16 + $0x4c] sm:$0x1]  ;;  %v2230_v18 = vld [vmem:[%s2904_s16 + $0x30] sm:$0xe] }
  0x57   : > { %2578 = vmatprep.subr.bf16.mxu0 %v2721_v36  ;;  %v736_v37 = vrot.slane %v734_v28, 5  ;;  %v563_v51 = vshll.u32 %v2192_v12, 16  ;;  %v2268_v41 = vcombine.low %v3254_v49, %v3259_v57  ;;  %v632_v42 = vsel %vm2942_vm5, %v2208_v3, %v631_v34 }
  0x58   : > { %1808 = vmatprep.mubr.bf16.mxu1 %v2271_v23  ;;  %v718_v40 = vrot.slane %v717_v30, 4  ;;  %v577_v43 = vshll.u32 %v2193_v19, 16  ;;  %v636_v53 = vsel %vm2942_vm5, %v2209_v29, %v635_v38  ;;  %v739_v55 = vshrl.u32 %v3299_v35, 16  ;;  %v2231_v23 = vld [vmem:[%s2904_s16 + $0x38] sm:$0xe] }
  0x59   : > { %1752 = vmatmul.mubr.bf16.gmra.mrb[24].mxu0 %v2260_v24  ;;  %1809 = vmatmul.mubr.bf16.gmra.mrb[20].mxu1 %v2267_v54  ;;  %v565_v54 = vrot.slane %v563_v51, 5  ;;  %v2265_v56 = vcombine.low %v632_v42, %v636_v53  ;;  %v742_v60 = vshll.u32 %v3299_v35, 16  ;;  %v748_v2 = vshll.u32 %v3312_v46, 16 }
  0x5a   : > { %2579 = vmatpush3.bf16.msra.mxu0 %v2721_v36  ;;  %v731_v36 = vor.u32 %v730_v44, %v727_v27  ;;  %v723_v49 = vsel %vm2934_vm4, %v718_v40, %v722_v26  ;;  %v579_v57 = vrot.slane %v577_v43, 5  ;;  %v753_v10 = vshrl.u32 %v3309_v45, 16  ;;  %v2232_v27 = vld [vmem:[%s2904_s16 + $0x40] sm:$0xe]  ;;  %v2233_v44 = vld [vmem:[%s2904_s16 + $0x48] sm:$0xe] }
  0x5b   : > { %2580 = vmatprep.subr.bf16.mxu0 %v2723_v1  ;;  %v566_v63 = vsel %vm2934_vm4, %v3198_v47, %v565_v54  ;;  %1759 = vmatprep.mubr.bf16.mxu0 %v2265_v56  ;;  %v744_v9 = vrot.slane %v742_v60, 5  ;;  %v2229_v47 = vld [vmem:[%s2904_s16 + $0x28] sm:$0xe]  ;;  %v750_v13 = vrot.slane %v748_v2, 5  ;;  %v756_v14 = vshll.u32 %v3309_v45, 16  ;;  %v2730_v56 = vld [vmem:[%s3421_s3 + $0x18] sm:$0xff]  }
  0x5c   : > { %v732_v48 = vrot.slane %v731_v36, 4  ;;  %v580_v8 = vsel %vm2934_vm4, %v3213_v7, %v579_v57  ;;  %v762_v17 = vshll.u32 %v3320_v59, 16  ;;  %v755_v20 = vrot.slane %v753_v10, 4  ;;  %v2731_v57 = vld [vmem:[%s3421_s3 + $0x20] sm:$0xff]   ;;  %v2733_v60 = vld [vmem:[%s3421_s3 + $0x30] sm:$0xff]  }
  0x5d   : > { %v2261_v12 = vcombine.low %v566_v63, %v580_v8  ;;  %v2234_v7 = vrot.slane %v2226_v4, 9  ;;  %v758_v24 = vrot.slane %v756_v14, 5  ;;  %v2235_v33 = vrot.slane %v2227_v5, 9  ;;  %v2278_v2 = vld [vmem:[%s3420_s2] ss:$0 sm:$0xff] }
  0x5e   : > { %2581 = vmatpush3.bf16.msra.mxu0 %v2723_v1  ;;  %v737_v61 = vsel %vm2934_vm4, %v732_v48, %v736_v37  ;;  %v741_v1 = vrot.slane %v739_v55, 4  ;;  %v764_v25 = vrot.slane %v762_v17, 5  ;;  %v796_v26 = vrot.slane %v3184_v32, 5 }
  0x5f   : > { %2582 = vmatprep.subr.bf16.mxu0 %v2724_v21  ;;  %v2272_v6 = vcombine.low %v723_v49, %v737_v61  ;;  %v2236_v3 = vrot.slane %v2228_v11, 9  ;;  %v2237_v34 = vrot.slane %v2229_v47, 9  ;;  %v759_v29 = vor.u32 %v758_v24, %v755_v20  ;;  %v2734_v61 = vld [vmem:[%s3421_s3 + $0x38] sm:$0xff]  }
  0x60   : > { %v745_v19 = vor.u32 %v744_v9, %v741_v1  ;;  %v2238_v36 = vrot.slane %v2230_v18, 9  ;;  %v808_v37 = vrot.slane %v3262_v58, 5  ;;  %v2239_v58 = vrot.slane %v2231_v23, 9 }
  0x61   : > { %1816 = vmatprep.mubr.bf16.mxu1 %v2272_v6  ;;  %1760 = vmatmul.mubr.bf16.gmra.mrb[28].mxu0 %v2261_v12  ;;  %v801_v51 = vsel %vm2942_vm5, %v2236_v3, %v800_v50  ;;  %v760_v40 = vrot.slane %v759_v29, 4  ;;  %v812_v43 = vrot.slane %v3271_v62, 5  ;;  %v2240_v48 = vrot.slane %v2232_v27, 9 }
  0x62   : > { %2583 = vmatpush3.bf16.msra.mxu0 %v2724_v21  ;;  %v792_v21 = vrot.slane %v3181_v31, 5  ;;  %1817 = vmatmul.mubr.bf16.gmra.mrb[24].mxu1 %v2268_v41  ;;  %v746_v28 = vrot.slane %v745_v19, 4  ;;  %v797_v31 = vsel %vm2942_vm5, %v2235_v33, %v796_v26  ;;  %v809_v42 = vsel %vm2942_vm5, %v2238_v36, %v808_v37 }
  0x63   : > { %2584 = vmatprep.subr.bf16.mxu0 %v2726_v39  ;;  %v816_v15 = vrot.slane %v3312_v46, 5  ;;  %v2241_v53 = vrot.slane %v2233_v44, 9  ;;  %v765_v50 = vsel %vm2934_vm4, %v760_v40, %v764_v25  ;;  %v2269_v16 = vcombine.low %v3299_v35, %v3309_v45  ;;  %v2727_v35 = vld [vmem:[%s3421_s3] sm:$0xff]   ;;  %v2728_v45 = vld [vmem:[%s3421_s3 + $0x8] sm:$0xff]  }
  0x64   : > { %v793_v30 = vsel %vm2942_vm5, %v2234_v7, %v792_v21  ;;  %v751_v38 = vsel %vm2934_vm4, %v746_v28, %v750_v13  ;;  %v813_v55 = vsel %vm2942_vm5, %v2239_v58, %v812_v43  ;;  %2594 = vmatprep.subr.bf16.mxu1 %v2727_v35 }
  0x65   : > { %v2274_v32 = vcombine.low %v793_v30, %v797_v31  ;;  %v2273_v54 = vcombine.low %v751_v38, %v765_v50  ;;  %v2276_v49 = vcombine.low %v809_v42, %v813_v55  ;;  %v817_v62 = vsel %vm2942_vm5, %v2240_v48, %v816_v15  ;;  %2595 = vmatpush3.bf16.msra.mxu1 %v2727_v35 }
  0x66   : > { %2585 = vmatpush3.bf16.msra.mxu0 %v2726_v39  ;;  %v805_v39 = vsel %vm2942_vm5, %v2237_v34, %v804_v22  ;;  %v820_v22 = vrot.slane %v3320_v59, 5  ;;  %2596 = vmatprep.subr.bf16.mxu1 %v2728_v45  ;;  %v2732_v59 = vld [vmem:[%s3421_s3 + $0x28] sm:$0xff]  }
  0x67   : > { %v2275_v41 = vcombine.low %v801_v51, %v805_v39  ;;  %2586 = vmatprep.mubr.bf16.mxu0 %v2274_v32  ;;  %1824 = vmatprep.mubr.bf16.mxu1 %v2273_v54 }
  0x68   : > { %v821_v46 = vsel %vm2942_vm5, %v2241_v53, %v820_v22 }
  0x69   : > { %2587 = vmatmul.mubr.bf16.vlgmr.msra.gmra.mrb[32].mxu0 %v2275_v41  ;;  %v2277_v52 = vcombine.low %v817_v62, %v821_v46  ;;  %2597 = vmatpush3.bf16.msra.mxu1 %v2728_v45 }
  0x6a   : > { %1825 = vmatmul.mubr.bf16.gmra.mrb[28].mxu1 %v2269_v16  ;;  %2590 = vmatprep.mubr.bf16.mxu0 %v2276_v49 }
  0x6b   : > { %2598 = vmatprep.subr.bf16.mxu1 %v2729_v0 }
  0x6d   : > { %2599 = vmatpush3.bf16.msra.mxu1 %v2729_v0 }
  0x6e   : > { %2600 = vmatprep.subr.bf16.mxu1 %v2730_v56 }
  0x71   : > { %2591 = vmatmul.mubr.bf16.gmra.mrb[36].mxu0 %v2277_v52  ;;  %2601 = vmatpush3.bf16.msra.mxu1 %v2730_v56 }
  0x72   : > { %2602 = vmatprep.subr.bf16.mxu1 %v2731_v57 }
  0x75   : > { %2603 = vmatpush3.bf16.msra.mxu1 %v2731_v57 }
  0x76   : > { %2604 = vmatprep.subr.bf16.mxu1 %v2732_v59 }
  0x79   : > { %2605 = vmatpush3.bf16.msra.mxu1 %v2732_v59 }
  0x7a   : > { %2606 = vmatprep.subr.bf16.mxu1 %v2733_v60 }
  0x7d   : > { %2607 = vmatpush3.bf16.msra.mxu1 %v2733_v60 }
  0x7e   : > { %2608 = vmatprep.subr.bf16.mxu1 %v2734_v61 }
  0x81   : > { %2609 = vmatpush3.bf16.msra.mxu1 %v2734_v61 }
  0xfa   : > { %v2402_v63 = vpop.f32.mrb[0].mxu0 }
  0xfb   : > { %v2403_v4 = vpop.f32.mrb[1].mxu0 }
  0xfc   : > { %v2442_v1 = vpop.f32.mrb[0].mxu1  ;;  %v2404_v6 = vadd.f32 %v2403_v4, %v2402_v63  ;;  %v2405_v8 = vpop.f32.mrb[2].mxu0 }
  0xfd   : > { %v2443_v5 = vpop.f32.mrb[1].mxu1  ;;  %v2406_v11 = vpop.f32.mrb[3].mxu0 }
  0xfe   : > { %v2444_v9 = vadd.f32 %v2443_v5, %v2442_v1  ;;  %v2445_v10 = vpop.f32.mrb[2].mxu1  ;;  %v1608_v12 = vadd.f32 %v2404_v6, %v2278_v2  ;;  %v2407_v13 = vadd.f32 %v2406_v11, %v2405_v8 }
  0xff   : > { %v2446_v47 = vpop.f32.mrb[3].mxu1 }
 0x100   : > { %v2447_v14 = vadd.f32 %v2446_v47, %v2445_v10  ;;  %v1611_v17 = vadd.f32 %v2407_v13, %v2278_v2  ;;  %v1673_v18 = vadd.f32 %v2444_v9, %v1608_v12 }
 0x102   : > { %v1676_v19 = vadd.f32 %v2447_v14, %v1611_v17 }
 0x104   : > { %v2408_v20 = vpop.f32.mrb[4].mxu0 }
 0x105   : > { %v2409_v7 = vpop.f32.mrb[5].mxu0 }
 0x106   : > { %v2448_v21 = vpop.f32.mrb[4].mxu1  ;;  %v2410_v23 = vadd.f32 %v2409_v7, %v2408_v20  ;;  %v2411_v24 = vpop.f32.mrb[6].mxu0 }
 0x107   : > { %v2449_v25 = vpop.f32.mrb[5].mxu1  ;;  %v2412_v33 = vpop.f32.mrb[7].mxu0 }
 0x108   : > { %v2450_v26 = vadd.f32 %v2449_v25, %v2448_v21  ;;  %v2451_v27 = vpop.f32.mrb[6].mxu1  ;;  %v1616_v44 = vadd.f32 %v2410_v23, %v2278_v2  ;;  %v2413_v28 = vadd.f32 %v2412_v33, %v2411_v24 }
 0x109   : > { %v2452_v30 = vpop.f32.mrb[7].mxu1 }
 0x10a   : > { %v2453_v3 = vadd.f32 %v2452_v30, %v2451_v27  ;;  %v1619_v34 = vadd.f32 %v2413_v28, %v2278_v2  ;;  %v1681_v29 = vadd.f32 %v2450_v26, %v1616_v44 }
 0x10c   : > { %v1684_v31 = vadd.f32 %v2453_v3, %v1619_v34  ;;  %v2414_v36 = vpop.f32.mrb[8].mxu0 }
 0x10d   : > { %v2415_v37 = vpop.f32.mrb[9].mxu0 }
 0x10e   : > { %v2454_v38 = vpop.f32.mrb[8].mxu1  ;;  %v2416_v32 = vadd.f32 %v2415_v37, %v2414_v36  ;;  %v2417_v51 = vpop.f32.mrb[10].mxu0 }
 0x10f   : > { %v2455_v39 = vpop.f32.mrb[9].mxu1  ;;  %v2418_v40 = vpop.f32.mrb[11].mxu0 }
 0x110   : > { %v2456_v41 = vadd.f32 %v2455_v39, %v2454_v38  ;;  %v2457_v42 = vpop.f32.mrb[10].mxu1  ;;  %v1624_v58 = vadd.f32 %v2416_v32, %v2278_v2  ;;  %v2419_v43 = vadd.f32 %v2418_v40, %v2417_v51 }
 0x111   : > { %v2458_v48 = vpop.f32.mrb[11].mxu1 }
 0x112   : > { %v2459_v15 = vadd.f32 %v2458_v48, %v2457_v42  ;;  %v1627_v53 = vadd.f32 %v2419_v43, %v2278_v2  ;;  %v1689_v50 = vadd.f32 %v2456_v41, %v1624_v58 }
 0x114   : > { %v1692_v16 = vadd.f32 %v2459_v15, %v1627_v53  ;;  %v2420_v22 = vpop.f32.mrb[12].mxu0 }
 0x115   : > { %v2421_v55 = vpop.f32.mrb[13].mxu0 }
 0x116   : > { %v2460_v54 = vpop.f32.mrb[12].mxu1  ;;  %v2422_v62 = vadd.f32 %v2421_v55, %v2420_v22  ;;  %v2423_v46 = vpop.f32.mrb[14].mxu0 }
 0x117   : > { %v2461_v49 = vpop.f32.mrb[13].mxu1  ;;  %v2424_v45 = vpop.f32.mrb[15].mxu0 }
 0x118   : > { %v2462_v52 = vadd.f32 %v2461_v49, %v2460_v54  ;;  %v2463_v35 = vpop.f32.mrb[14].mxu1  ;;  %v1632_v56 = vadd.f32 %v2422_v62, %v2278_v2  ;;  %v2425_v57 = vadd.f32 %v2424_v45, %v2423_v46 }
 0x119   : > { %v2464_v0 = vpop.f32.mrb[15].mxu1 }
 0x11a   : > { %v2465_v59 = vadd.f32 %v2464_v0, %v2463_v35  ;;  %v1635_v60 = vadd.f32 %v2425_v57, %v2278_v2  ;;  %v1697_v61 = vadd.f32 %v2462_v52, %v1632_v56 }
 0x11c   : > { %v1700_v63 = vadd.f32 %v2465_v59, %v1635_v60  ;;  %v2482_v1 = vpop.f32.mrb[16].mxu0 }
 0x11d   : > { %v2483_v4 = vpop.f32.mrb[17].mxu0 }
 0x11e   : > { %v2484_v5 = vadd.f32 %v2483_v4, %v2482_v1  ;;  %v2485_v6 = vpop.f32.mrb[18].mxu0 }
 0x11f   : > { %v2486_v8 = vpop.f32.mrb[19].mxu0 }
 0x120   : > { %v1738_v9 = vadd.f32 %v2484_v5, %v1673_v18  ;;  %v2487_v10 = vadd.f32 %v2486_v8, %v2485_v6 }
 0x121   : > { %v2522_v12 = vpop.f32.mrb[16].mxu1 }
 0x122   : > { %v1741_v11 = vadd.f32 %v2487_v10, %v1676_v19  ;;  %v2523_v14 = vpop.f32.mrb[17].mxu1 }
 0x123   : > { %v2524_v7 = vadd.f32 %v2523_v14, %v2522_v12  ;;  %v2525_v21 = vpop.f32.mrb[18].mxu1 }
 0x124   : > { %v2488_v47 = vpop.f32.mrb[20].mxu0  ;;  %v2526_v2 = vpop.f32.mrb[19].mxu1 }
 0x125   : > { %v2489_v13 = vpop.f32.mrb[21].mxu0  ;;  %v2527_v33 = vadd.f32 %v2526_v2, %v2525_v21  ;;  %v1803_v26 = vadd.f32 %v2524_v7, %v1738_v9 }
 0x126   : > { %v2490_v17 = vadd.f32 %v2489_v13, %v2488_v47  ;;  %v2491_v20 = vpop.f32.mrb[22].mxu0 }
 0x127   : > { %v2492_v23 = vpop.f32.mrb[23].mxu0  ;;  %v1806_v44 = vadd.f32 %v2527_v33, %v1741_v11 }
 0x128   : > { %v1746_v24 = vadd.f32 %v2490_v17, %v1681_v29  ;;  %v2493_v25 = vadd.f32 %v2492_v23, %v2491_v20 }
 0x12a   : > { %v1749_v27 = vadd.f32 %v2493_v25, %v1684_v31 }
 0x12c   : > { %v2494_v28 = vpop.f32.mrb[24].mxu0  ;;  %v2528_v18 = vpop.f32.mrb[20].mxu1 }
 0x12d   : > { %v2495_v30 = vpop.f32.mrb[25].mxu0  ;;  %v2529_v19 = vpop.f32.mrb[21].mxu1 }
 0x12e   : > { %v2496_v3 = vadd.f32 %v2495_v30, %v2494_v28  ;;  %v2497_v34 = vpop.f32.mrb[26].mxu0  ;;  %v2530_v36 = vadd.f32 %v2529_v19, %v2528_v18  ;;  %v2531_v37 = vpop.f32.mrb[22].mxu1 }
 0x12f   : > { %v2498_v38 = vpop.f32.mrb[27].mxu0  ;;  %v2532_v32 = vpop.f32.mrb[23].mxu1 }
 0x130   : > { %v1754_v51 = vadd.f32 %v2496_v3, %v1689_v50  ;;  %v2499_v39 = vadd.f32 %v2498_v38, %v2497_v34  ;;  %v2533_v40 = vadd.f32 %v2532_v32, %v2531_v37  ;;  %v1811_v41 = vadd.f32 %v2530_v36, %v1746_v24  ;;  %v2351_v3 = vld [vmem:[%s3422_s4] ss:$0 sm:$0xff] }
 0x132   : > { %v1757_v29 = vadd.f32 %v2499_v39, %v1692_v16  ;;  %v1814_v42 = vadd.f32 %v2533_v40, %v1749_v27 }
 0x134   : > { %v2500_v43 = vpop.f32.mrb[28].mxu0 }
 0x135   : > { %v2534_v58 = vpop.f32.mrb[24].mxu1  ;;  %v2501_v48 = vpop.f32.mrb[29].mxu0 }
 0x136   : > { %v2535_v31 = vpop.f32.mrb[25].mxu1  ;;  %v2502_v22 = vadd.f32 %v2501_v48, %v2500_v43  ;;  %v2503_v54 = vpop.f32.mrb[30].mxu0 }
 0x137   : > { %v2536_v15 = vadd.f32 %v2535_v31, %v2534_v58  ;;  %v2537_v53 = vpop.f32.mrb[26].mxu1  ;;  %v2504_v49 = vpop.f32.mrb[31].mxu0 }
 0x138   : > { %v2538_v55 = vpop.f32.mrb[27].mxu1  ;;  %v1762_v46 = vadd.f32 %v2502_v22, %v1697_v61  ;;  %v2505_v52 = vadd.f32 %v2504_v49, %v2503_v54 }
 0x139   : > { %v2539_v62 = vadd.f32 %v2538_v55, %v2537_v53  ;;  %v1819_v35 = vadd.f32 %v2536_v15, %v1754_v51 }
 0x13a   : > { %v1765_v50 = vadd.f32 %v2505_v52, %v1700_v63 }
 0x13b   : > { %v1822_v45 = vadd.f32 %v2539_v62, %v1757_v29 }
 0x13c   : > { %v2588_v0 = vpop.f32.mrb[32].mxu0 }
 0x13d   : > { %v1876_v56 = vadd.f32 %v2588_v0, %v1811_v41  ;;  %v1867_v16 = vpop.f32.mrb[33].mxu0  ;;  %v2540_v57 = vpop.f32.mrb[28].mxu1 }
 0x13e   : > { %v1868_v59 = vadd.f32 %v1867_v16, %v1803_v26  ;;  %v2589_v60 = vpop.f32.mrb[34].mxu0  ;;  %v2541_v1 = vpop.f32.mrb[29].mxu1 }
 0x13f   : > { %v1879_v4 = vadd.f32 %v2589_v60, %v1814_v42  ;;  %v1870_v5 = vpop.f32.mrb[35].mxu0  ;;  %v2542_v6 = vadd.f32 %v2541_v1, %v2540_v57  ;;  %v2543_v8 = vpop.f32.mrb[30].mxu1  ;;  %v1900_v11 = vmax.f32 %v1876_v56, 0.0 }
 0x140   : > { %v1871_v9 = vadd.f32 %v1870_v5, %v1806_v44  ;;  %v2544_v10 = vpop.f32.mrb[31].mxu1  ;;  %v1898_v12 = vmax.f32 %v1868_v59, 0.0 }
 0x141   : > { %v1901_v47 = vmax.f32 %v1879_v4, 0.0  ;;  %v2545_v61 = vadd.f32 %v2544_v10, %v2543_v8  ;;  %v1827_v63 = vadd.f32 %v2542_v6, %v1762_v46 }
 0x142   : > { %v1899_v13 = vmax.f32 %v1871_v9, 0.0 }
 0x143   : > { %v1907_v14 = vpack.c.bf16 %v1901_v47, %v1900_v11  ;;  %v1830_v7 = vadd.f32 %v2545_v61, %v1765_v50 }
 0x144   : > { %v1906_v17 = vpack.c.bf16 %v1899_v13, %v1898_v12  ;;  %v2592_v20 = vpop.f32.mrb[36].mxu0 }
 0x145   : > { %v1892_v21 = vadd.f32 %v2592_v20, %v1827_v63  ;;  %v1883_v23 = vpop.f32.mrb[37].mxu0 }
 0x146   : > { %v1884_v2 = vadd.f32 %v1883_v23, %v1819_v35  ;;  %v2593_v24 = vpop.f32.mrb[38].mxu0  ;;  %2610 = vmatprep.mubr.bf16.mxu1 %v1906_v17 }
 0x147   : > { %v1895_v25 = vadd.f32 %v2593_v24, %v1830_v7  ;;  %v1886_v33 = vpop.f32.mrb[39].mxu0  ;;  %2611 = vmatmul.mubr.bf16.vlgmr.msra.gmra.mrb[32].mxu1 %v1907_v14  ;;  %v1904_v27 = vmax.f32 %v1892_v21, 0.0 }
 0x148   : > { %v1887_v26 = vadd.f32 %v1886_v33, %v1822_v45  ;;  %v1902_v28 = vmax.f32 %v1884_v2, 0.0 }
 0x149   : > { %v1905_v44 = vmax.f32 %v1895_v25, 0.0 }
 0x14a   : > { %v1903_v18 = vmax.f32 %v1887_v26, 0.0 }
 0x14b   : > { %v1909_v30 = vpack.c.bf16 %v1905_v44, %v1904_v27 }
 0x14c   : > { %v1908_v19 = vpack.c.bf16 %v1903_v18, %v1902_v28 }
 0x14e   : > { %2614 = vmatprep.mubr.bf16.mxu1 %v1908_v19 }
 0x14f   : > { %2615 = vmatmul.mubr.bf16.gmra.mrb[36].mxu1 %v1909_v30 }
 0x21a   : > { %v2612_v34 = vpop.f32.mrb[32].mxu1 }
 0x21b   : > { %v2024_v36 = vadd.f32 %v2612_v34, %v2351_v3  ;;  %v2015_v37 = vpop.f32.mrb[33].mxu1 }
 0x21c   : > { %v2016_v38 = vadd.f32 %v2351_v3, %v2015_v37  ;;  %v2613_v32 = vpop.f32.mrb[34].mxu1 }
 0x21d   : > { %v2027_v51 = vadd.f32 %v2613_v32, %v2351_v3  ;;  %v2018_v39 = vpop.f32.mrb[35].mxu1  ;;  %v2048_v41 = vmax.f32 %v2024_v36, 0.0 }
 0x21e   : > { %v2019_v40 = vadd.f32 %v2351_v3, %v2018_v39  ;;  %v2046_v42 = vmax.f32 %v2016_v38, 0.0 }
 0x21f   : > { %v2049_v29 = vmax.f32 %v2027_v51, 0.0 }
 0x220   : > { %v2047_v58 = vmax.f32 %v2019_v40, 0.0 }
 0x221   : > { %v2371_v43 = vpack.c.bf16 %v2049_v29, %v2048_v41 }
 0x222   : > { %v2366_v31 = vpack.c.bf16 %v2047_v58, %v2046_v42  ;;  %v2616_v48 = vpop.f32.mrb[36].mxu1 }
 0x223   : > { %2383 = vst [vmem:[%s260_s28 + $0x8] sm:$0xff] %v2371_v43   ;;  %v2040_v15 = vadd.f32 %v2616_v48, %v2351_v3  ;;  %v2031_v53 = vpop.f32.mrb[37].mxu1 }
 0x224   : > { %2367 = vst [vmem:[%s260_s28] sm:$0xff] %v2366_v31   ;;  %v2032_v22 = vadd.f32 %v2351_v3, %v2031_v53  ;;  %v2617_v54 = vpop.f32.mrb[38].mxu1 }
 0x225   : > { %v2043_v55 = vadd.f32 %v2617_v54, %v2351_v3  ;;  %v2034_v49 = vpop.f32.mrb[39].mxu1  ;;  %v2052_v46 = vmax.f32 %v2040_v15, 0.0 }
 0x226   : > { %v2035_v62 = vadd.f32 %v2351_v3, %v2034_v49  ;;  %v2050_v35 = vmax.f32 %v2032_v22, 0.0 }
 0x227   : > { %v2053_v52 = vmax.f32 %v2043_v55, 0.0 }
 0x228   : > { %v2051_v50 = vmax.f32 %v2035_v62, 0.0 }
 0x229   : > { %v2381_v45 = vpack.c.bf16 %v2053_v52, %v2052_v46 }
 0x22a   : > { %v2376_v0 = vpack.c.bf16 %v2051_v50, %v2050_v35 }
 0x22b   : > { %2385 = vst [vmem:[%s260_s28 + $0x18] sm:$0xff] %v2381_v45  }
 0x22c   : > { %2384 = vst [vmem:[%s260_s28 + $0x10] sm:$0xff] %v2376_v0  }
 0x22d PF: > { %s15_s20 = sadd.s32 1, %s2757_s20   ;;  %s3428_s18 = smov %s2753_s19 }
 0x22e   : > { %p12_p5 = scmp.ge.s32.totalorder %s15_s20, 4   ;;  %s3429_s19 = smov %s3431_s21 }
 0x230   :  { %14 = sbr.rel (!%p12_p5) target bundleno = 2 (0x2), region = 72 }

</bundles_post_ra>
